<compile_context>
chip_gen: v6e
topology: v6e:2x2x1
jax: 0.10.0
libtpu: 0.0.40
codegen_flags: <defaults>
</compile_context>

<pallas_src>
from functools import partial

import jax
import jax.numpy as jnp
from jax.experimental import pallas as pl
from jax.experimental.pallas import tpu as pltpu


def decoder_kernel(inp_ref, y_ref, wcomb_ref, wpre_ref, w2bd_ref, prow_ref, out_ref):
    inp = inp_ref[...]             # (B, S*I)  flattened encoder outputs (lane-dense)
    yv = y_ref[...]                # (B, S)
    B, SI = inp.shape
    S = yv.shape[1]
    wcomb = wcomb_ref[...]         # (2O, 4O + S*I)
    O = wcomb.shape[0] // 2
    G = 4 * O
    wpre = wpre_ref[...]           # (S*I, S*I + 2S)
    w2bd = w2bd_ref[...]           # (S*I, S)
    prow = prow_ref[...]           # (8, pack_w) packed small params

    # ---- unpack packed small parameters (static lane slices, hoisted) ----
    b1t = prow[0:1, :SI]           # (1, S*I)  tuning bias b1, tiled over S
    wih = prow[1:2, :G]            # (1, 4O)   LSTM W_ih^T   (sigmoid lanes pre-scaled 0.5)
    blstm = prow[2:3, :G]          # (1, 4O)   b_ih + b_hh   (sigmoid lanes pre-scaled 0.5)
    a_vec = prow[3:4, :G]          # (1, 4O)   0.5 on i/f/o lanes, 1.0 on g lanes
    b_vec = prow[4:5, :G]          # (1, 4O)   0.5 on i/f/o lanes, 0.0 on g lanes
    wfc1h = prow[5:6, :O]          # (1, O)    fc1 weights for the hidden part
    wfc_y = prow[6:7, 0:1]         # (1, 1)    fc weight for y_data
    bfc = prow[6:7, 1:2]           # (1, 1)
    bfc1 = prow[6:7, 2:3]          # (1, 1)

    # ---- hoisted loop-invariant work (emitted once, not S times) ----
    # inp @ [blockdiag(w1x) | blockdiag(wfc_c) | blockdiag(wfc1_c)]  : one MXU call
    pre = jnp.dot(inp, wpre, preferred_element_type=jnp.float32)   # (B, S*I + 2S)
    ip_proj = pre[:, :SI] + b1t    # (B, S*I)  per-step attention input projection (+ b1)
    proj_ctx = pre[:, SI:SI + S]   # (B, S)    inp[b,s] . wfc_c
    proj_ctx1 = pre[:, SI + S:]    # (B, S)    inp[b,s] . wfc1_c
    y_contrib = yv * wfc_y + bfc   # (B, S)    fc contribution of y_data (all steps at once)

    # hoisted broadcasts (JAX does not CSE broadcast_in_dim)
    wih_b = jnp.broadcast_to(wih, (B, G))
    blstm_b = jnp.broadcast_to(blstm, (B, G))
    a_b = jnp.broadcast_to(a_vec, (B, G))
    b_b = jnp.broadcast_to(b_vec, (B, G))

    h = jnp.zeros((B, O), jnp.float32)
    c = jnp.zeros((B, O), jnp.float32)
    alpha = jnp.zeros((B, S), jnp.float32)

    for T in range(S):  # static unroll; S = time_step - 1 = 7 here
        # ---- ONE fused lane-dense matmul per step on the serial recurrence path ----
        hc = jnp.concatenate([h, c], axis=1)                              # (B, 2O)
        comb = jnp.dot(hc, wcomb, preferred_element_type=jnp.float32)     # (B, 4O + S*I)
        gates_rec = comb[:, :G]                                           # (B, 4O)  (tile-aligned)

        # ---- attention over the S encoder steps (flat, lane-dense) ----
        z = jnp.tanh(ip_proj + comb[:, G:])                               # (B, S*I)  1 EUP pass
        # scores via block-diag(w2) on the MXU; b2 dropped (softmax shift-invariant, exact)
        scores = jnp.dot(z, w2bd, preferred_element_type=jnp.float32)     # (B, S)
        scores = scores - jnp.max(scores, axis=-1, keepdims=True)
        e = jnp.exp(scores)
        alpha = e / jnp.sum(e, axis=-1, keepdims=True)                    # exact softmax

        # ---- y_tilde = fc([context, y_T]) without materializing context ----
        y_tilde = (jnp.sum(alpha * proj_ctx, axis=-1, keepdims=True)
                   + y_contrib[:, T:T + 1])                               # (B, 1)

        # ---- LSTM cell: one 128-lane gate block, ONE full-width EUP tanh ----
        gates = y_tilde * wih_b + gates_rec + blstm_b                     # (B, 4O)
        t = jnp.tanh(gates)
        act = t * a_b + b_b              # sigmoid on i/f/o lanes, tanh on g lanes (exact)
        i_g = act[:, 0 * O:1 * O]
        f_g = act[:, 1 * O:2 * O]
        g_g = act[:, 2 * O:3 * O]
        o_g = act[:, 3 * O:4 * O]
        c = f_g * c + i_g * g_g
        h = o_g * jnp.tanh(c)

    # ---- y_pred = fc1([hidden, context]); context . wfc1_c re-expressed via alpha ----
    out_ref[...] = (jnp.sum(h * wfc1h, axis=-1, keepdims=True)
                    + jnp.sum(alpha * proj_ctx1, axis=-1, keepdims=True)
                    + bfc1)


def pack_decoder_params(W1, b1, W2, b2, Wih_t, Whh_t, blstm, Wfc, bfc, Wfc1, bfc1,
                        *, input_size, output_size, time_step):
    """Weight preprocessing: fuse / block-diagonalize / pack the PyTorch-convention params.

    Math convention everywhere: out = x @ W + b (i.e. transposed nn.Linear weights).
    """
    I, O, S = input_size, output_size, time_step - 1
    f32 = jnp.float32

    # per-lane 0.5 pre-scale for the sigmoid gates (i, f, o); tanh gate (g) unscaled.
    gate_scale = jnp.concatenate([jnp.full((O,), 0.5, f32), jnp.full((O,), 0.5, f32),
                                  jnp.ones((O,), f32), jnp.full((O,), 0.5, f32)])
    a_vec = gate_scale                                           # tanh -> sigmoid affine: a
    b_vec = jnp.concatenate([jnp.full((O,), 0.5, f32), jnp.full((O,), 0.5, f32),
                             jnp.zeros((O,), f32), jnp.full((O,), 0.5, f32)])

    W1_h = W1[:O, :]          # (O, I)   tuning weights acting on h
    W1_c = W1[O:2 * O, :]     # (O, I)   tuning weights acting on c
    w1x = W1[2 * O:, :]       # (I, I)   tuning weights acting on the encoder input

    # fused per-step state matmul: [h|c] @ W_comb -> [recurrent gate term | hc tiled over S]
    top = jnp.concatenate([Whh_t * gate_scale[None, :], jnp.tile(W1_h, (1, S))], axis=1)
    bot = jnp.concatenate([jnp.zeros((O, 4 * O), f32), jnp.tile(W1_c, (1, S))], axis=1)
    wcomb = jnp.concatenate([top, bot], axis=0).astype(f32)      # (2O, 4O + S*I)

    # hoisted input projections (block-diagonal, done once per kernel call):
    eyeS = jnp.eye(S, dtype=f32)
    w1x_bd = jnp.kron(eyeS, w1x)                                 # (S*I, S*I)
    wfc_bd = jnp.kron(eyeS, Wfc[:I, :])                          # (S*I, S)
    wfc1c_bd = jnp.kron(eyeS, Wfc1[O:, :])                       # (S*I, S)
    wpre = jnp.concatenate([w1x_bd, wfc_bd, wfc1c_bd], axis=1)   # (S*I, S*I + 2S)

    # per-step attention-score projection (b2 dropped: softmax is shift-invariant)
    w2_bd = jnp.kron(eyeS, W2).astype(f32)                       # (S*I, S)

    # packed small row / scalar parameters -> single (8, pack_w) block
    pack_w = max(S * I, 4 * O, 3)
    pack_w = ((pack_w + 127) // 128) * 128
    prow = jnp.zeros((8, pack_w), f32)
    prow = prow.at[0, :S * I].set(jnp.tile(b1, S))
    prow = prow.at[1, :4 * O].set(Wih_t[0] * gate_scale)
    prow = prow.at[2, :4 * O].set(blstm[0] * gate_scale)
    prow = prow.at[3, :4 * O].set(a_vec)
    prow = prow.at[4, :4 * O].set(b_vec)
    prow = prow.at[5, :O].set(Wfc1[:O, 0])
    prow = prow.at[6, 0].set(Wfc[I, 0])
    prow = prow.at[6, 1].set(bfc[0])
    prow = prow.at[6, 2].set(bfc1[0])
    return wcomb, wpre, w2_bd, prow


@partial(jax.jit, static_argnames=("tb",))
def decoder_pallas(inp, y, wcomb, wpre, w2bd, prow, tb=None):
    B, S, I = inp.shape
    if tb is None:
        tb = B                      # grid=(1,): no batch split on single-TC chips (v5e/v6e)
    assert B % tb == 0, "batch must be a multiple of the batch tile"
    inp_flat = inp.reshape(B, S * I)   # relayout happens in XLA, not in-kernel
    grid = (B // tb,)

    return pl.pallas_call(
        decoder_kernel,
        out_shape=jax.ShapeDtypeStruct((B, 1), jnp.float32),
        grid=grid,
        in_specs=[
            pl.BlockSpec((tb, S * I), lambda b: (b, 0)),      # encoder outputs, lane-dense
            pl.BlockSpec((tb, S), lambda b: (b, 0)),          # y_data
            pl.BlockSpec(wcomb.shape, lambda b: (0, 0)),      # fused state matmul weights
            pl.BlockSpec(wpre.shape, lambda b: (0, 0)),       # hoisted input projections
            pl.BlockSpec(w2bd.shape, lambda b: (0, 0)),       # attention score projection
            pl.BlockSpec(prow.shape, lambda b: (0, 0)),       # packed small params
        ],
        out_specs=pl.BlockSpec((tb, 1), lambda b: (b, 0)),
        compiler_params=pltpu.CompilerParams(
            dimension_semantics=("parallel",)),               # only matters if tb < B (v7x A/B)
    )(inp_flat, y, wcomb, wpre, w2bd, prow)


def reference_forward(inp, y, full_params):
    """Plain-JAX mirror of the PyTorch forward (concat-based), for verification."""
    W1, b1, W2, b2, Wih_t, Whh_t, blstm, Wfc, bfc, Wfc1, bfc1 = full_params
    B, S, I = inp.shape
    O = Whh_t.shape[0]
    h = jnp.zeros((B, O), jnp.float32)
    c = jnp.zeros((B, O), jnp.float32)
    context = jnp.zeros((B, I), jnp.float32)
    for T in range(S):
        hrep = jnp.broadcast_to(h[:, None, :], (B, S, O))
        crep = jnp.broadcast_to(c[:, None, :], (B, S, O))
        x = jnp.concatenate([hrep, crep, inp], axis=2).reshape(B * S, 2 * O + I)
        e = (jnp.tanh(x @ W1 + b1) @ W2 + b2).reshape(B, S)
        alpha = jax.nn.softmax(e, axis=-1)
        context = jnp.einsum('bs,bsi->bi', alpha, inp)
        y_tilde = jnp.concatenate([context, y[:, T:T + 1]], axis=1) @ Wfc + bfc
        gates = y_tilde @ Wih_t + h @ Whh_t + blstm
        i_g = jax.nn.sigmoid(gates[:, 0 * O:1 * O])
        f_g = jax.nn.sigmoid(gates[:, 1 * O:2 * O])
        g_g = jnp.tanh(gates[:, 2 * O:3 * O])
        o_g = jax.nn.sigmoid(gates[:, 3 * O:4 * O])
        c = f_g * c + i_g * g_g
        h = o_g * jnp.tanh(c)
    return jnp.concatenate([h, context], axis=1) @ Wfc1 + bfc1


if __name__ == "__main__":
    # Small shapes consistent with the module (batch a multiple of the 8-sublane tile).
    B, time_step, input_size, output_size = 16, 8, 16, 32
    S = time_step - 1
    I, O = input_size, output_size

    key = jax.random.PRNGKey(0)
    ks = jax.random.split(key, 13)
    f32 = jnp.float32

    inp = jax.random.normal(ks[0], (B, S, I), f32)
    y = jax.random.normal(ks[1], (B, S), f32)

    # Deterministic synthetic parameters (math convention: out = x @ W + b).
    W1 = 0.1 * jax.random.normal(ks[2], (2 * O + I, I), f32)      # tuning.0
    b1 = 0.1 * jax.random.normal(ks[3], (I,), f32)
    W2 = 0.1 * jax.random.normal(ks[4], (I, 1), f32)              # tuning.2
    b2 = 0.1 * jax.random.normal(ks[5], (1,), f32)
    Wih_t = 0.1 * jax.random.normal(ks[6], (1, 4 * O), f32)       # LSTM W_ih^T (gates i,f,g,o)
    Whh_t = 0.1 * jax.random.normal(ks[7], (O, 4 * O), f32)       # LSTM W_hh^T
    blstm = 0.1 * jax.random.normal(ks[8], (1, 4 * O), f32)       # b_ih + b_hh
    Wfc = 0.1 * jax.random.normal(ks[9], (I + 1, 1), f32)         # fc
    bfc = 0.1 * jax.random.normal(ks[10], (1,), f32)
    Wfc1 = 0.1 * jax.random.normal(ks[11], (O + I, 1), f32)       # fc1
    bfc1 = 0.1 * jax.random.normal(ks[12], (1,), f32)

    full_params = (W1, b1, W2, b2, Wih_t, Whh_t, blstm, Wfc, bfc, Wfc1, bfc1)

    # TODO(synk): gate order (i,f,g,o) / transposed-weight convention is validated against the
    # JAX reference below, not against a real torch.nn.LSTM state_dict.
    wcomb, wpre, w2bd, prow = pack_decoder_params(
        *full_params, input_size=I, output_size=O, time_step=time_step)

    out = decoder_pallas(inp, y, wcomb, wpre, w2bd, prow)
    jax.block_until_ready(out)

    ref = reference_forward(inp, y, full_params)
    assert out.shape == (B, 1)
    # Tolerance covers TPU default-precision f32 matmuls + fp reassociation from the fusions
    # (softmax now uses the exact divide; b2 removal and tanh-based sigmoid are exact).
    if not jnp.allclose(out, ref, rtol=1e-2, atol=1e-2):
        max_err = float(jnp.max(jnp.abs(out - ref)))
        raise ValueError(f"Pallas kernel output does not match JAX reference (max |err|={max_err})")

    print("KERNEL_OK")
</pallas_src>

<mosaic_0001>
module attributes {stable_mosaic.version = 11 : i64} {
  func.func @decoder_kernel(%arg0: i32, %arg1: memref<16x112xf32, #tpu.memory_space<vmem>>, %arg2: memref<16x7xf32, #tpu.memory_space<vmem>>, %arg3: memref<64x240xf32, #tpu.memory_space<vmem>>, %arg4: memref<112x126xf32, #tpu.memory_space<vmem>>, %arg5: memref<112x7xf32, #tpu.memory_space<vmem>>, %arg6: memref<8x128xf32, #tpu.memory_space<vmem>>, %arg7: memref<16x1xf32, #tpu.memory_space<vmem>>) attributes {dimension_semantics = [#tpu.dimension_semantics<parallel>], iteration_bounds = array<i64: 1>, scalar_prefetch = 0 : i64, scratch_operands = 0 : i64, tpu.core_type = #tpu.core_type<tc>, window_params = [{transform_indices = @transform_0, window_bounds = array<i64: 16, 112>}, {transform_indices = @transform_1, window_bounds = array<i64: 16, 7>}, {pipeline_mode = #tpu.pipeline_mode<synchronous>, transform_indices = @transform_2, window_bounds = array<i64: 64, 240>}, {pipeline_mode = #tpu.pipeline_mode<synchronous>, transform_indices = @transform_3, window_bounds = array<i64: 112, 126>}, {pipeline_mode = #tpu.pipeline_mode<synchronous>, transform_indices = @transform_4, window_bounds = array<i64: 112, 7>}, {pipeline_mode = #tpu.pipeline_mode<synchronous>, transform_indices = @transform_5, window_bounds = array<i64: 8, 128>}, {transform_indices = @transform_6, window_bounds = array<i64: 16, 1>}]} {
    %c0 = arith.constant 0 : index
    %c0_0 = arith.constant 0 : index
    %0 = vector.load %arg1[%c0, %c0_0] : memref<16x112xf32, #tpu.memory_space<vmem>>, vector<16x112xf32>
    %c0_1 = arith.constant 0 : index
    %c0_2 = arith.constant 0 : index
    %1 = vector.load %arg2[%c0_1, %c0_2] : memref<16x7xf32, #tpu.memory_space<vmem>>, vector<16x7xf32>
    %c0_3 = arith.constant 0 : index
    %c0_4 = arith.constant 0 : index
    %2 = vector.load %arg3[%c0_3, %c0_4] : memref<64x240xf32, #tpu.memory_space<vmem>>, vector<64x240xf32>
    %c0_5 = arith.constant 0 : index
    %c0_6 = arith.constant 0 : index
    %3 = vector.load %arg4[%c0_5, %c0_6] : memref<112x126xf32, #tpu.memory_space<vmem>>, vector<112x126xf32>
    %c0_7 = arith.constant 0 : index
    %c0_8 = arith.constant 0 : index
    %4 = vector.load %arg5[%c0_7, %c0_8] : memref<112x7xf32, #tpu.memory_space<vmem>>, vector<112x7xf32>
    %c0_9 = arith.constant 0 : index
    %c0_10 = arith.constant 0 : index
    %5 = vector.load %arg6[%c0_9, %c0_10] : memref<8x128xf32, #tpu.memory_space<vmem>>, vector<8x128xf32>
    %6 = vector.extract_strided_slice %5 {offsets = [0, 0], sizes = [1, 112], strides = [1, 1]} : vector<8x128xf32> to vector<1x112xf32>
    %7 = vector.extract_strided_slice %5 {offsets = [1, 0], sizes = [1, 128], strides = [1, 1]} : vector<8x128xf32> to vector<1x128xf32>
    %8 = vector.extract_strided_slice %5 {offsets = [2, 0], sizes = [1, 128], strides = [1, 1]} : vector<8x128xf32> to vector<1x128xf32>
    %9 = vector.extract_strided_slice %5 {offsets = [3, 0], sizes = [1, 128], strides = [1, 1]} : vector<8x128xf32> to vector<1x128xf32>
    %10 = vector.extract_strided_slice %5 {offsets = [4, 0], sizes = [1, 128], strides = [1, 1]} : vector<8x128xf32> to vector<1x128xf32>
    %11 = vector.extract_strided_slice %5 {offsets = [5, 0], sizes = [1, 32], strides = [1, 1]} : vector<8x128xf32> to vector<1x32xf32>
    %12 = vector.extract_strided_slice %5 {offsets = [6, 0], sizes = [1, 1], strides = [1, 1]} : vector<8x128xf32> to vector<1x1xf32>
    %13 = vector.extract_strided_slice %5 {offsets = [6, 1], sizes = [1, 1], strides = [1, 1]} : vector<8x128xf32> to vector<1x1xf32>
    %14 = vector.extract_strided_slice %5 {offsets = [6, 2], sizes = [1, 1], strides = [1, 1]} : vector<8x128xf32> to vector<1x1xf32>
    %cst = arith.constant dense<0.000000e+00> : vector<16x126xf32>
    %15 = tpu.matmul %0, %3, %cst {dimension_numbers = #tpu.dot_dimension_numbers<[1], [0], [0], [1], [0, 0, 1, 1], [], []>} : vector<16x112xf32>, vector<112x126xf32>, vector<16x126xf32> -> vector<16x126xf32>
    %16 = vector.extract_strided_slice %15 {offsets = [0, 0], sizes = [16, 112], strides = [1, 1]} : vector<16x126xf32> to vector<16x112xf32>
    %17 = vector.broadcast %6 : vector<1x112xf32> to vector<16x112xf32>
    %18 = arith.addf %16, %17 : vector<16x112xf32>
    %19 = vector.extract_strided_slice %15 {offsets = [0, 112], sizes = [16, 7], strides = [1, 1]} : vector<16x126xf32> to vector<16x7xf32>
    %20 = vector.extract_strided_slice %15 {offsets = [0, 119], sizes = [16, 7], strides = [1, 1]} : vector<16x126xf32> to vector<16x7xf32>
    %21 = vector.broadcast %12 : vector<1x1xf32> to vector<16x7xf32>
    %22 = arith.mulf %1, %21 : vector<16x7xf32>
    %23 = vector.broadcast %13 : vector<1x1xf32> to vector<16x7xf32>
    %24 = arith.addf %22, %23 : vector<16x7xf32>
    %25 = vector.shape_cast %7 : vector<1x128xf32> to vector<1x128xf32>
    %26 = vector.broadcast %25 : vector<1x128xf32> to vector<16x128xf32>
    %27 = vector.shape_cast %8 : vector<1x128xf32> to vector<1x128xf32>
    %28 = vector.broadcast %27 : vector<1x128xf32> to vector<16x128xf32>
    %29 = vector.shape_cast %9 : vector<1x128xf32> to vector<1x128xf32>
    %30 = vector.broadcast %29 : vector<1x128xf32> to vector<16x128xf32>
    %31 = vector.shape_cast %10 : vector<1x128xf32> to vector<1x128xf32>
    %32 = vector.broadcast %31 : vector<1x128xf32> to vector<16x128xf32>
    %cst_11 = arith.constant 0.000000e+00 : f32
    %33 = vector.broadcast %cst_11 : f32 to vector<16x32xf32>
    %cst_12 = arith.constant 0.000000e+00 : f32
    %34 = vector.broadcast %cst_12 : f32 to vector<16x32xf32>
    %35 = tpu.concatenate %33, %34 in 1 : vector<16x32xf32>, vector<16x32xf32> -> vector<16x64xf32>
    %cst_13 = arith.constant dense<0.000000e+00> : vector<16x240xf32>
    %36 = tpu.matmul %35, %2, %cst_13 {dimension_numbers = #tpu.dot_dimension_numbers<[1], [0], [0], [1], [0, 0, 1, 1], [], []>} : vector<16x64xf32>, vector<64x240xf32>, vector<16x240xf32> -> vector<16x240xf32>
    %37 = vector.extract_strided_slice %36 {offsets = [0, 0], sizes = [16, 128], strides = [1, 1]} : vector<16x240xf32> to vector<16x128xf32>
    %38 = vector.extract_strided_slice %36 {offsets = [0, 128], sizes = [16, 112], strides = [1, 1]} : vector<16x240xf32> to vector<16x112xf32>
    %39 = arith.addf %18, %38 : vector<16x112xf32>
    %40 = math.tanh %39 : vector<16x112xf32>
    %cst_14 = arith.constant dense<0.000000e+00> : vector<16x7xf32>
    %41 = tpu.matmul %40, %4, %cst_14 {dimension_numbers = #tpu.dot_dimension_numbers<[1], [0], [0], [1], [0, 0, 1, 1], [], []>} : vector<16x112xf32>, vector<112x7xf32>, vector<16x7xf32> -> vector<16x7xf32>
    %cst_15 = arith.constant dense<0xFF800000> : vector<16xf32>
    %42 = vector.multi_reduction <maximumf>, %41, %cst_15 [1] : vector<16x7xf32> to vector<16xf32>
    %43 = vector.shape_cast %42 : vector<16xf32> to vector<16x1xf32>
    %44 = vector.broadcast %43 : vector<16x1xf32> to vector<16x7xf32>
    %45 = arith.subf %41, %44 : vector<16x7xf32>
    %46 = math.exp %45 : vector<16x7xf32>
    %cst_16 = arith.constant dense<0.000000e+00> : vector<16xf32>
    %47 = vector.multi_reduction <add>, %46, %cst_16 [1] : vector<16x7xf32> to vector<16xf32>
    %48 = vector.shape_cast %47 : vector<16xf32> to vector<16x1xf32>
    %49 = vector.broadcast %48 : vector<16x1xf32> to vector<16x7xf32>
    %50 = arith.divf %46, %49 : vector<16x7xf32>
    %51 = arith.mulf %50, %19 : vector<16x7xf32>
    %cst_17 = arith.constant dense<0.000000e+00> : vector<16xf32>
    %52 = vector.multi_reduction <add>, %51, %cst_17 [1] : vector<16x7xf32> to vector<16xf32>
    %53 = vector.shape_cast %52 : vector<16xf32> to vector<16x1xf32>
    %54 = vector.extract_strided_slice %24 {offsets = [0, 0], sizes = [16, 1], strides = [1, 1]} : vector<16x7xf32> to vector<16x1xf32>
    %55 = arith.addf %53, %54 : vector<16x1xf32>
    %56 = vector.broadcast %55 : vector<16x1xf32> to vector<16x128xf32>
    %57 = arith.mulf %56, %26 : vector<16x128xf32>
    %58 = arith.addf %57, %37 : vector<16x128xf32>
    %59 = arith.addf %58, %28 : vector<16x128xf32>
    %60 = math.tanh %59 : vector<16x128xf32>
    %61 = arith.mulf %60, %30 : vector<16x128xf32>
    %62 = arith.addf %61, %32 : vector<16x128xf32>
    %63 = vector.extract_strided_slice %62 {offsets = [0, 0], sizes = [16, 32], strides = [1, 1]} : vector<16x128xf32> to vector<16x32xf32>
    %64 = vector.extract_strided_slice %62 {offsets = [0, 32], sizes = [16, 32], strides = [1, 1]} : vector<16x128xf32> to vector<16x32xf32>
    %65 = vector.extract_strided_slice %62 {offsets = [0, 64], sizes = [16, 32], strides = [1, 1]} : vector<16x128xf32> to vector<16x32xf32>
    %66 = vector.extract_strided_slice %62 {offsets = [0, 96], sizes = [16, 32], strides = [1, 1]} : vector<16x128xf32> to vector<16x32xf32>
    %67 = arith.mulf %64, %34 : vector<16x32xf32>
    %68 = arith.mulf %63, %65 : vector<16x32xf32>
    %69 = arith.addf %67, %68 : vector<16x32xf32>
    %70 = math.tanh %69 : vector<16x32xf32>
    %71 = arith.mulf %66, %70 : vector<16x32xf32>
    %72 = tpu.concatenate %71, %69 in 1 : vector<16x32xf32>, vector<16x32xf32> -> vector<16x64xf32>
    %cst_18 = arith.constant dense<0.000000e+00> : vector<16x240xf32>
    %73 = tpu.matmul %72, %2, %cst_18 {dimension_numbers = #tpu.dot_dimension_numbers<[1], [0], [0], [1], [0, 0, 1, 1], [], []>} : vector<16x64xf32>, vector<64x240xf32>, vector<16x240xf32> -> vector<16x240xf32>
    %74 = vector.extract_strided_slice %73 {offsets = [0, 0], sizes = [16, 128], strides = [1, 1]} : vector<16x240xf32> to vector<16x128xf32>
    %75 = vector.extract_strided_slice %73 {offsets = [0, 128], sizes = [16, 112], strides = [1, 1]} : vector<16x240xf32> to vector<16x112xf32>
    %76 = arith.addf %18, %75 : vector<16x112xf32>
    %77 = math.tanh %76 : vector<16x112xf32>
    %cst_19 = arith.constant dense<0.000000e+00> : vector<16x7xf32>
    %78 = tpu.matmul %77, %4, %cst_19 {dimension_numbers = #tpu.dot_dimension_numbers<[1], [0], [0], [1], [0, 0, 1, 1], [], []>} : vector<16x112xf32>, vector<112x7xf32>, vector<16x7xf32> -> vector<16x7xf32>
    %cst_20 = arith.constant dense<0xFF800000> : vector<16xf32>
    %79 = vector.multi_reduction <maximumf>, %78, %cst_20 [1] : vector<16x7xf32> to vector<16xf32>
    %80 = vector.shape_cast %79 : vector<16xf32> to vector<16x1xf32>
    %81 = vector.broadcast %80 : vector<16x1xf32> to vector<16x7xf32>
    %82 = arith.subf %78, %81 : vector<16x7xf32>
    %83 = math.exp %82 : vector<16x7xf32>
    %cst_21 = arith.constant dense<0.000000e+00> : vector<16xf32>
    %84 = vector.multi_reduction <add>, %83, %cst_21 [1] : vector<16x7xf32> to vector<16xf32>
    %85 = vector.shape_cast %84 : vector<16xf32> to vector<16x1xf32>
    %86 = vector.broadcast %85 : vector<16x1xf32> to vector<16x7xf32>
    %87 = arith.divf %83, %86 : vector<16x7xf32>
    %88 = arith.mulf %87, %19 : vector<16x7xf32>
    %cst_22 = arith.constant dense<0.000000e+00> : vector<16xf32>
    %89 = vector.multi_reduction <add>, %88, %cst_22 [1] : vector<16x7xf32> to vector<16xf32>
    %90 = vector.shape_cast %89 : vector<16xf32> to vector<16x1xf32>
    %91 = vector.extract_strided_slice %24 {offsets = [0, 1], sizes = [16, 1], strides = [1, 1]} : vector<16x7xf32> to vector<16x1xf32>
    %92 = arith.addf %90, %91 : vector<16x1xf32>
    %93 = vector.broadcast %92 : vector<16x1xf32> to vector<16x128xf32>
    %94 = arith.mulf %93, %26 : vector<16x128xf32>
    %95 = arith.addf %94, %74 : vector<16x128xf32>
    %96 = arith.addf %95, %28 : vector<16x128xf32>
    %97 = math.tanh %96 : vector<16x128xf32>
    %98 = arith.mulf %97, %30 : vector<16x128xf32>
    %99 = arith.addf %98, %32 : vector<16x128xf32>
    %100 = vector.extract_strided_slice %99 {offsets = [0, 0], sizes = [16, 32], strides = [1, 1]} : vector<16x128xf32> to vector<16x32xf32>
    %101 = vector.extract_strided_slice %99 {offsets = [0, 32], sizes = [16, 32], strides = [1, 1]} : vector<16x128xf32> to vector<16x32xf32>
    %102 = vector.extract_strided_slice %99 {offsets = [0, 64], sizes = [16, 32], strides = [1, 1]} : vector<16x128xf32> to vector<16x32xf32>
    %103 = vector.extract_strided_slice %99 {offsets = [0, 96], sizes = [16, 32], strides = [1, 1]} : vector<16x128xf32> to vector<16x32xf32>
    %104 = arith.mulf %101, %69 : vector<16x32xf32>
    %105 = arith.mulf %100, %102 : vector<16x32xf32>
    %106 = arith.addf %104, %105 : vector<16x32xf32>
    %107 = math.tanh %106 : vector<16x32xf32>
    %108 = arith.mulf %103, %107 : vector<16x32xf32>
    %109 = tpu.concatenate %108, %106 in 1 : vector<16x32xf32>, vector<16x32xf32> -> vector<16x64xf32>
    %cst_23 = arith.constant dense<0.000000e+00> : vector<16x240xf32>
    %110 = tpu.matmul %109, %2, %cst_23 {dimension_numbers = #tpu.dot_dimension_numbers<[1], [0], [0], [1], [0, 0, 1, 1], [], []>} : vector<16x64xf32>, vector<64x240xf32>, vector<16x240xf32> -> vector<16x240xf32>
    %111 = vector.extract_strided_slice %110 {offsets = [0, 0], sizes = [16, 128], strides = [1, 1]} : vector<16x240xf32> to vector<16x128xf32>
    %112 = vector.extract_strided_slice %110 {offsets = [0, 128], sizes = [16, 112], strides = [1, 1]} : vector<16x240xf32> to vector<16x112xf32>
    %113 = arith.addf %18, %112 : vector<16x112xf32>
    %114 = math.tanh %113 : vector<16x112xf32>
    %cst_24 = arith.constant dense<0.000000e+00> : vector<16x7xf32>
    %115 = tpu.matmul %114, %4, %cst_24 {dimension_numbers = #tpu.dot_dimension_numbers<[1], [0], [0], [1], [0, 0, 1, 1], [], []>} : vector<16x112xf32>, vector<112x7xf32>, vector<16x7xf32> -> vector<16x7xf32>
    %cst_25 = arith.constant dense<0xFF800000> : vector<16xf32>
    %116 = vector.multi_reduction <maximumf>, %115, %cst_25 [1] : vector<16x7xf32> to vector<16xf32>
    %117 = vector.shape_cast %116 : vector<16xf32> to vector<16x1xf32>
    %118 = vector.broadcast %117 : vector<16x1xf32> to vector<16x7xf32>
    %119 = arith.subf %115, %118 : vector<16x7xf32>
    %120 = math.exp %119 : vector<16x7xf32>
    %cst_26 = arith.constant dense<0.000000e+00> : vector<16xf32>
    %121 = vector.multi_reduction <add>, %120, %cst_26 [1] : vector<16x7xf32> to vector<16xf32>
    %122 = vector.shape_cast %121 : vector<16xf32> to vector<16x1xf32>
    %123 = vector.broadcast %122 : vector<16x1xf32> to vector<16x7xf32>
    %124 = arith.divf %120, %123 : vector<16x7xf32>
    %125 = arith.mulf %124, %19 : vector<16x7xf32>
    %cst_27 = arith.constant dense<0.000000e+00> : vector<16xf32>
    %126 = vector.multi_reduction <add>, %125, %cst_27 [1] : vector<16x7xf32> to vector<16xf32>
    %127 = vector.shape_cast %126 : vector<16xf32> to vector<16x1xf32>
    %128 = vector.extract_strided_slice %24 {offsets = [0, 2], sizes = [16, 1], strides = [1, 1]} : vector<16x7xf32> to vector<16x1xf32>
    %129 = arith.addf %127, %128 : vector<16x1xf32>
    %130 = vector.broadcast %129 : vector<16x1xf32> to vector<16x128xf32>
    %131 = arith.mulf %130, %26 : vector<16x128xf32>
    %132 = arith.addf %131, %111 : vector<16x128xf32>
    %133 = arith.addf %132, %28 : vector<16x128xf32>
    %134 = math.tanh %133 : vector<16x128xf32>
    %135 = arith.mulf %134, %30 : vector<16x128xf32>
    %136 = arith.addf %135, %32 : vector<16x128xf32>
    %137 = vector.extract_strided_slice %136 {offsets = [0, 0], sizes = [16, 32], strides = [1, 1]} : vector<16x128xf32> to vector<16x32xf32>
    %138 = vector.extract_strided_slice %136 {offsets = [0, 32], sizes = [16, 32], strides = [1, 1]} : vector<16x128xf32> to vector<16x32xf32>
    %139 = vector.extract_strided_slice %136 {offsets = [0, 64], sizes = [16, 32], strides = [1, 1]} : vector<16x128xf32> to vector<16x32xf32>
    %140 = vector.extract_strided_slice %136 {offsets = [0, 96], sizes = [16, 32], strides = [1, 1]} : vector<16x128xf32> to vector<16x32xf32>
    %141 = arith.mulf %138, %106 : vector<16x32xf32>
    %142 = arith.mulf %137, %139 : vector<16x32xf32>
    %143 = arith.addf %141, %142 : vector<16x32xf32>
    %144 = math.tanh %143 : vector<16x32xf32>
    %145 = arith.mulf %140, %144 : vector<16x32xf32>
    %146 = tpu.concatenate %145, %143 in 1 : vector<16x32xf32>, vector<16x32xf32> -> vector<16x64xf32>
    %cst_28 = arith.constant dense<0.000000e+00> : vector<16x240xf32>
    %147 = tpu.matmul %146, %2, %cst_28 {dimension_numbers = #tpu.dot_dimension_numbers<[1], [0], [0], [1], [0, 0, 1, 1], [], []>} : vector<16x64xf32>, vector<64x240xf32>, vector<16x240xf32> -> vector<16x240xf32>
    %148 = vector.extract_strided_slice %147 {offsets = [0, 0], sizes = [16, 128], strides = [1, 1]} : vector<16x240xf32> to vector<16x128xf32>
    %149 = vector.extract_strided_slice %147 {offsets = [0, 128], sizes = [16, 112], strides = [1, 1]} : vector<16x240xf32> to vector<16x112xf32>
    %150 = arith.addf %18, %149 : vector<16x112xf32>
    %151 = math.tanh %150 : vector<16x112xf32>
    %cst_29 = arith.constant dense<0.000000e+00> : vector<16x7xf32>
    %152 = tpu.matmul %151, %4, %cst_29 {dimension_numbers = #tpu.dot_dimension_numbers<[1], [0], [0], [1], [0, 0, 1, 1], [], []>} : vector<16x112xf32>, vector<112x7xf32>, vector<16x7xf32> -> vector<16x7xf32>
    %cst_30 = arith.constant dense<0xFF800000> : vector<16xf32>
    %153 = vector.multi_reduction <maximumf>, %152, %cst_30 [1] : vector<16x7xf32> to vector<16xf32>
    %154 = vector.shape_cast %153 : vector<16xf32> to vector<16x1xf32>
    %155 = vector.broadcast %154 : vector<16x1xf32> to vector<16x7xf32>
    %156 = arith.subf %152, %155 : vector<16x7xf32>
    %157 = math.exp %156 : vector<16x7xf32>
    %cst_31 = arith.constant dense<0.000000e+00> : vector<16xf32>
    %158 = vector.multi_reduction <add>, %157, %cst_31 [1] : vector<16x7xf32> to vector<16xf32>
    %159 = vector.shape_cast %158 : vector<16xf32> to vector<16x1xf32>
    %160 = vector.broadcast %159 : vector<16x1xf32> to vector<16x7xf32>
    %161 = arith.divf %157, %160 : vector<16x7xf32>
    %162 = arith.mulf %161, %19 : vector<16x7xf32>
    %cst_32 = arith.constant dense<0.000000e+00> : vector<16xf32>
    %163 = vector.multi_reduction <add>, %162, %cst_32 [1] : vector<16x7xf32> to vector<16xf32>
    %164 = vector.shape_cast %163 : vector<16xf32> to vector<16x1xf32>
    %165 = vector.extract_strided_slice %24 {offsets = [0, 3], sizes = [16, 1], strides = [1, 1]} : vector<16x7xf32> to vector<16x1xf32>
    %166 = arith.addf %164, %165 : vector<16x1xf32>
    %167 = vector.broadcast %166 : vector<16x1xf32> to vector<16x128xf32>
    %168 = arith.mulf %167, %26 : vector<16x128xf32>
    %169 = arith.addf %168, %148 : vector<16x128xf32>
    %170 = arith.addf %169, %28 : vector<16x128xf32>
    %171 = math.tanh %170 : vector<16x128xf32>
    %172 = arith.mulf %171, %30 : vector<16x128xf32>
    %173 = arith.addf %172, %32 : vector<16x128xf32>
    %174 = vector.extract_strided_slice %173 {offsets = [0, 0], sizes = [16, 32], strides = [1, 1]} : vector<16x128xf32> to vector<16x32xf32>
    %175 = vector.extract_strided_slice %173 {offsets = [0, 32], sizes = [16, 32], strides = [1, 1]} : vector<16x128xf32> to vector<16x32xf32>
    %176 = vector.extract_strided_slice %173 {offsets = [0, 64], sizes = [16, 32], strides = [1, 1]} : vector<16x128xf32> to vector<16x32xf32>
    %177 = vector.extract_strided_slice %173 {offsets = [0, 96], sizes = [16, 32], strides = [1, 1]} : vector<16x128xf32> to vector<16x32xf32>
    %178 = arith.mulf %175, %143 : vector<16x32xf32>
    %179 = arith.mulf %174, %176 : vector<16x32xf32>
    %180 = arith.addf %178, %179 : vector<16x32xf32>
    %181 = math.tanh %180 : vector<16x32xf32>
    %182 = arith.mulf %177, %181 : vector<16x32xf32>
    %183 = tpu.concatenate %182, %180 in 1 : vector<16x32xf32>, vector<16x32xf32> -> vector<16x64xf32>
    %cst_33 = arith.constant dense<0.000000e+00> : vector<16x240xf32>
    %184 = tpu.matmul %183, %2, %cst_33 {dimension_numbers = #tpu.dot_dimension_numbers<[1], [0], [0], [1], [0, 0, 1, 1], [], []>} : vector<16x64xf32>, vector<64x240xf32>, vector<16x240xf32> -> vector<16x240xf32>
    %185 = vector.extract_strided_slice %184 {offsets = [0, 0], sizes = [16, 128], strides = [1, 1]} : vector<16x240xf32> to vector<16x128xf32>
    %186 = vector.extract_strided_slice %184 {offsets = [0, 128], sizes = [16, 112], strides = [1, 1]} : vector<16x240xf32> to vector<16x112xf32>
    %187 = arith.addf %18, %186 : vector<16x112xf32>
    %188 = math.tanh %187 : vector<16x112xf32>
    %cst_34 = arith.constant dense<0.000000e+00> : vector<16x7xf32>
    %189 = tpu.matmul %188, %4, %cst_34 {dimension_numbers = #tpu.dot_dimension_numbers<[1], [0], [0], [1], [0, 0, 1, 1], [], []>} : vector<16x112xf32>, vector<112x7xf32>, vector<16x7xf32> -> vector<16x7xf32>
    %cst_35 = arith.constant dense<0xFF800000> : vector<16xf32>
    %190 = vector.multi_reduction <maximumf>, %189, %cst_35 [1] : vector<16x7xf32> to vector<16xf32>
    %191 = vector.shape_cast %190 : vector<16xf32> to vector<16x1xf32>
    %192 = vector.broadcast %191 : vector<16x1xf32> to vector<16x7xf32>
    %193 = arith.subf %189, %192 : vector<16x7xf32>
    %194 = math.exp %193 : vector<16x7xf32>
    %cst_36 = arith.constant dense<0.000000e+00> : vector<16xf32>
    %195 = vector.multi_reduction <add>, %194, %cst_36 [1] : vector<16x7xf32> to vector<16xf32>
    %196 = vector.shape_cast %195 : vector<16xf32> to vector<16x1xf32>
    %197 = vector.broadcast %196 : vector<16x1xf32> to vector<16x7xf32>
    %198 = arith.divf %194, %197 : vector<16x7xf32>
    %199 = arith.mulf %198, %19 : vector<16x7xf32>
    %cst_37 = arith.constant dense<0.000000e+00> : vector<16xf32>
    %200 = vector.multi_reduction <add>, %199, %cst_37 [1] : vector<16x7xf32> to vector<16xf32>
    %201 = vector.shape_cast %200 : vector<16xf32> to vector<16x1xf32>
    %202 = vector.extract_strided_slice %24 {offsets = [0, 4], sizes = [16, 1], strides = [1, 1]} : vector<16x7xf32> to vector<16x1xf32>
    %203 = arith.addf %201, %202 : vector<16x1xf32>
    %204 = vector.broadcast %203 : vector<16x1xf32> to vector<16x128xf32>
    %205 = arith.mulf %204, %26 : vector<16x128xf32>
    %206 = arith.addf %205, %185 : vector<16x128xf32>
    %207 = arith.addf %206, %28 : vector<16x128xf32>
    %208 = math.tanh %207 : vector<16x128xf32>
    %209 = arith.mulf %208, %30 : vector<16x128xf32>
    %210 = arith.addf %209, %32 : vector<16x128xf32>
    %211 = vector.extract_strided_slice %210 {offsets = [0, 0], sizes = [16, 32], strides = [1, 1]} : vector<16x128xf32> to vector<16x32xf32>
    %212 = vector.extract_strided_slice %210 {offsets = [0, 32], sizes = [16, 32], strides = [1, 1]} : vector<16x128xf32> to vector<16x32xf32>
    %213 = vector.extract_strided_slice %210 {offsets = [0, 64], sizes = [16, 32], strides = [1, 1]} : vector<16x128xf32> to vector<16x32xf32>
    %214 = vector.extract_strided_slice %210 {offsets = [0, 96], sizes = [16, 32], strides = [1, 1]} : vector<16x128xf32> to vector<16x32xf32>
    %215 = arith.mulf %212, %180 : vector<16x32xf32>
    %216 = arith.mulf %211, %213 : vector<16x32xf32>
    %217 = arith.addf %215, %216 : vector<16x32xf32>
    %218 = math.tanh %217 : vector<16x32xf32>
    %219 = arith.mulf %214, %218 : vector<16x32xf32>
    %220 = tpu.concatenate %219, %217 in 1 : vector<16x32xf32>, vector<16x32xf32> -> vector<16x64xf32>
    %cst_38 = arith.constant dense<0.000000e+00> : vector<16x240xf32>
    %221 = tpu.matmul %220, %2, %cst_38 {dimension_numbers = #tpu.dot_dimension_numbers<[1], [0], [0], [1], [0, 0, 1, 1], [], []>} : vector<16x64xf32>, vector<64x240xf32>, vector<16x240xf32> -> vector<16x240xf32>
    %222 = vector.extract_strided_slice %221 {offsets = [0, 0], sizes = [16, 128], strides = [1, 1]} : vector<16x240xf32> to vector<16x128xf32>
    %223 = vector.extract_strided_slice %221 {offsets = [0, 128], sizes = [16, 112], strides = [1, 1]} : vector<16x240xf32> to vector<16x112xf32>
    %224 = arith.addf %18, %223 : vector<16x112xf32>
    %225 = math.tanh %224 : vector<16x112xf32>
    %cst_39 = arith.constant dense<0.000000e+00> : vector<16x7xf32>
    %226 = tpu.matmul %225, %4, %cst_39 {dimension_numbers = #tpu.dot_dimension_numbers<[1], [0], [0], [1], [0, 0, 1, 1], [], []>} : vector<16x112xf32>, vector<112x7xf32>, vector<16x7xf32> -> vector<16x7xf32>
    %cst_40 = arith.constant dense<0xFF800000> : vector<16xf32>
    %227 = vector.multi_reduction <maximumf>, %226, %cst_40 [1] : vector<16x7xf32> to vector<16xf32>
    %228 = vector.shape_cast %227 : vector<16xf32> to vector<16x1xf32>
    %229 = vector.broadcast %228 : vector<16x1xf32> to vector<16x7xf32>
    %230 = arith.subf %226, %229 : vector<16x7xf32>
    %231 = math.exp %230 : vector<16x7xf32>
    %cst_41 = arith.constant dense<0.000000e+00> : vector<16xf32>
    %232 = vector.multi_reduction <add>, %231, %cst_41 [1] : vector<16x7xf32> to vector<16xf32>
    %233 = vector.shape_cast %232 : vector<16xf32> to vector<16x1xf32>
    %234 = vector.broadcast %233 : vector<16x1xf32> to vector<16x7xf32>
    %235 = arith.divf %231, %234 : vector<16x7xf32>
    %236 = arith.mulf %235, %19 : vector<16x7xf32>
    %cst_42 = arith.constant dense<0.000000e+00> : vector<16xf32>
    %237 = vector.multi_reduction <add>, %236, %cst_42 [1] : vector<16x7xf32> to vector<16xf32>
    %238 = vector.shape_cast %237 : vector<16xf32> to vector<16x1xf32>
    %239 = vector.extract_strided_slice %24 {offsets = [0, 5], sizes = [16, 1], strides = [1, 1]} : vector<16x7xf32> to vector<16x1xf32>
    %240 = arith.addf %238, %239 : vector<16x1xf32>
    %241 = vector.broadcast %240 : vector<16x1xf32> to vector<16x128xf32>
    %242 = arith.mulf %241, %26 : vector<16x128xf32>
    %243 = arith.addf %242, %222 : vector<16x128xf32>
    %244 = arith.addf %243, %28 : vector<16x128xf32>
    %245 = math.tanh %244 : vector<16x128xf32>
    %246 = arith.mulf %245, %30 : vector<16x128xf32>
    %247 = arith.addf %246, %32 : vector<16x128xf32>
    %248 = vector.extract_strided_slice %247 {offsets = [0, 0], sizes = [16, 32], strides = [1, 1]} : vector<16x128xf32> to vector<16x32xf32>
    %249 = vector.extract_strided_slice %247 {offsets = [0, 32], sizes = [16, 32], strides = [1, 1]} : vector<16x128xf32> to vector<16x32xf32>
    %250 = vector.extract_strided_slice %247 {offsets = [0, 64], sizes = [16, 32], strides = [1, 1]} : vector<16x128xf32> to vector<16x32xf32>
    %251 = vector.extract_strided_slice %247 {offsets = [0, 96], sizes = [16, 32], strides = [1, 1]} : vector<16x128xf32> to vector<16x32xf32>
    %252 = arith.mulf %249, %217 : vector<16x32xf32>
    %253 = arith.mulf %248, %250 : vector<16x32xf32>
    %254 = arith.addf %252, %253 : vector<16x32xf32>
    %255 = math.tanh %254 : vector<16x32xf32>
    %256 = arith.mulf %251, %255 : vector<16x32xf32>
    %257 = tpu.concatenate %256, %254 in 1 : vector<16x32xf32>, vector<16x32xf32> -> vector<16x64xf32>
    %cst_43 = arith.constant dense<0.000000e+00> : vector<16x240xf32>
    %258 = tpu.matmul %257, %2, %cst_43 {dimension_numbers = #tpu.dot_dimension_numbers<[1], [0], [0], [1], [0, 0, 1, 1], [], []>} : vector<16x64xf32>, vector<64x240xf32>, vector<16x240xf32> -> vector<16x240xf32>
    %259 = vector.extract_strided_slice %258 {offsets = [0, 0], sizes = [16, 128], strides = [1, 1]} : vector<16x240xf32> to vector<16x128xf32>
    %260 = vector.extract_strided_slice %258 {offsets = [0, 128], sizes = [16, 112], strides = [1, 1]} : vector<16x240xf32> to vector<16x112xf32>
    %261 = arith.addf %18, %260 : vector<16x112xf32>
    %262 = math.tanh %261 : vector<16x112xf32>
    %cst_44 = arith.constant dense<0.000000e+00> : vector<16x7xf32>
    %263 = tpu.matmul %262, %4, %cst_44 {dimension_numbers = #tpu.dot_dimension_numbers<[1], [0], [0], [1], [0, 0, 1, 1], [], []>} : vector<16x112xf32>, vector<112x7xf32>, vector<16x7xf32> -> vector<16x7xf32>
    %cst_45 = arith.constant dense<0xFF800000> : vector<16xf32>
    %264 = vector.multi_reduction <maximumf>, %263, %cst_45 [1] : vector<16x7xf32> to vector<16xf32>
    %265 = vector.shape_cast %264 : vector<16xf32> to vector<16x1xf32>
    %266 = vector.broadcast %265 : vector<16x1xf32> to vector<16x7xf32>
    %267 = arith.subf %263, %266 : vector<16x7xf32>
    %268 = math.exp %267 : vector<16x7xf32>
    %cst_46 = arith.constant dense<0.000000e+00> : vector<16xf32>
    %269 = vector.multi_reduction <add>, %268, %cst_46 [1] : vector<16x7xf32> to vector<16xf32>
    %270 = vector.shape_cast %269 : vector<16xf32> to vector<16x1xf32>
    %271 = vector.broadcast %270 : vector<16x1xf32> to vector<16x7xf32>
    %272 = arith.divf %268, %271 : vector<16x7xf32>
    %273 = arith.mulf %272, %19 : vector<16x7xf32>
    %cst_47 = arith.constant dense<0.000000e+00> : vector<16xf32>
    %274 = vector.multi_reduction <add>, %273, %cst_47 [1] : vector<16x7xf32> to vector<16xf32>
    %275 = vector.shape_cast %274 : vector<16xf32> to vector<16x1xf32>
    %276 = vector.extract_strided_slice %24 {offsets = [0, 6], sizes = [16, 1], strides = [1, 1]} : vector<16x7xf32> to vector<16x1xf32>
    %277 = arith.addf %275, %276 : vector<16x1xf32>
    %278 = vector.broadcast %277 : vector<16x1xf32> to vector<16x128xf32>
    %279 = arith.mulf %278, %26 : vector<16x128xf32>
    %280 = arith.addf %279, %259 : vector<16x128xf32>
    %281 = arith.addf %280, %28 : vector<16x128xf32>
    %282 = math.tanh %281 : vector<16x128xf32>
    %283 = arith.mulf %282, %30 : vector<16x128xf32>
    %284 = arith.addf %283, %32 : vector<16x128xf32>
    %285 = vector.extract_strided_slice %284 {offsets = [0, 0], sizes = [16, 32], strides = [1, 1]} : vector<16x128xf32> to vector<16x32xf32>
    %286 = vector.extract_strided_slice %284 {offsets = [0, 32], sizes = [16, 32], strides = [1, 1]} : vector<16x128xf32> to vector<16x32xf32>
    %287 = vector.extract_strided_slice %284 {offsets = [0, 64], sizes = [16, 32], strides = [1, 1]} : vector<16x128xf32> to vector<16x32xf32>
    %288 = vector.extract_strided_slice %284 {offsets = [0, 96], sizes = [16, 32], strides = [1, 1]} : vector<16x128xf32> to vector<16x32xf32>
    %289 = arith.mulf %286, %254 : vector<16x32xf32>
    %290 = arith.mulf %285, %287 : vector<16x32xf32>
    %291 = arith.addf %289, %290 : vector<16x32xf32>
    %292 = math.tanh %291 : vector<16x32xf32>
    %293 = arith.mulf %288, %292 : vector<16x32xf32>
    %294 = vector.broadcast %11 : vector<1x32xf32> to vector<16x32xf32>
    %295 = arith.mulf %293, %294 : vector<16x32xf32>
    %cst_48 = arith.constant dense<0.000000e+00> : vector<16xf32>
    %296 = vector.multi_reduction <add>, %295, %cst_48 [1] : vector<16x32xf32> to vector<16xf32>
    %297 = vector.shape_cast %296 : vector<16xf32> to vector<16x1xf32>
    %298 = arith.mulf %272, %20 : vector<16x7xf32>
    %cst_49 = arith.constant dense<0.000000e+00> : vector<16xf32>
    %299 = vector.multi_reduction <add>, %298, %cst_49 [1] : vector<16x7xf32> to vector<16xf32>
    %300 = vector.shape_cast %299 : vector<16xf32> to vector<16x1xf32>
    %301 = arith.addf %297, %300 : vector<16x1xf32>
    %302 = vector.broadcast %14 : vector<1x1xf32> to vector<16x1xf32>
    %303 = arith.addf %301, %302 : vector<16x1xf32>
    %c0_50 = arith.constant 0 : index
    %c0_51 = arith.constant 0 : index
    %304 = vector.load %arg7[%c0_50, %c0_51] : memref<16x1xf32, #tpu.memory_space<vmem>>, vector<16x1xf32>
    tpu.vector_store %arg7[%c0_50, %c0_51], %303 {strides = array<i32>} : memref<16x1xf32, #tpu.memory_space<vmem>>, vector<16x1xf32>,
    return
  }
  func.func @transform_0(%arg0: i32) -> (i32, i32) {
    %c0_i32 = arith.constant 0 : i32
    %c0_i32_0 = arith.constant 0 : i32
    return %arg0, %c0_i32 : i32, i32
  }
  func.func @transform_1(%arg0: i32) -> (i32, i32) {
    %c0_i32 = arith.constant 0 : i32
    %c0_i32_0 = arith.constant 0 : i32
    return %arg0, %c0_i32 : i32, i32
  }
  func.func @transform_2(%arg0: i32) -> (i32, i32) {
    %c0_i32 = arith.constant 0 : i32
    %c0_i32_0 = arith.constant 0 : i32
    %c0_i32_1 = arith.constant 0 : i32
    return %c0_i32, %c0_i32_0 : i32, i32
  }
  func.func @transform_3(%arg0: i32) -> (i32, i32) {
    %c0_i32 = arith.constant 0 : i32
    %c0_i32_0 = arith.constant 0 : i32
    %c0_i32_1 = arith.constant 0 : i32
    return %c0_i32, %c0_i32_0 : i32, i32
  }
  func.func @transform_4(%arg0: i32) -> (i32, i32) {
    %c0_i32 = arith.constant 0 : i32
    %c0_i32_0 = arith.constant 0 : i32
    %c0_i32_1 = arith.constant 0 : i32
    return %c0_i32, %c0_i32_0 : i32, i32
  }
  func.func @transform_5(%arg0: i32) -> (i32, i32) {
    %c0_i32 = arith.constant 0 : i32
    %c0_i32_0 = arith.constant 0 : i32
    %c0_i32_1 = arith.constant 0 : i32
    return %c0_i32, %c0_i32_0 : i32, i32
  }
  func.func @transform_6(%arg0: i32) -> (i32, i32) {
    %c0_i32 = arith.constant 0 : i32
    %c0_i32_0 = arith.constant 0 : i32
    return %arg0, %c0_i32 : i32, i32
  }
}

</mosaic_0001>

<bundles_post_ra>
// kernel: decoder_pallas.1
= control target key start
LH: loop header
LB: loop body
LE: loop exit
PB: predicated region body
PF: predicated region fallthrough
CT: control target
= control target key end

     0   :  { %v2719_v2 = vmov 0.0   ;;  %vm72_vm0 = vcmask 916480   ;;  %v154_v47 = vlaneseq  ;;  %vm356_vm1 = vcmask 56320   ;;  %s2720_s15 = smov 16   ;;  %s2721_s16 = smov 127   ;;  %s3846_s3 = inlined_call_operand.vmem [shape: f32[112,126], index: 3, kind: input, shape index: {}]   ;;  %s3847_s2 = inlined_call_operand.vmem [shape: f32[64,240], index: 2, kind: input, shape index: {}]   ;;  %s3848_s0 = inlined_call_operand.vmem [shape: f32[16,112], index: 0, kind: input, shape index: {}]   ;;  %s3849_s4 = inlined_call_operand.vmem [shape: f32[112,7], index: 4, kind: input, shape index: {}]   ;;  %s3850_s5 = inlined_call_operand.vmem [shape: f32[8,128], index: 5, kind: input, shape index: {}]   ;;  %s3851_s1 = inlined_call_operand.vmem [shape: f32[16,7], index: 1, kind: input, shape index: {}]   ;;  %s3852_s6 = inlined_call_operand.vmem [shape: f32[16,1], index: 6, kind: output, shape index: {}]  }
   0x1   :  { %v56_v0 = vld [vmem:[%s3846_s3 + $0x68] sm:$0xff]  ;;  %v55_v1 = vld [vmem:[%s3846_s3 + $0x60] sm:$0xff]  ;;  %258 = vmatprep.mubr.f32.mxu1 %v2719_v2  ;;  %v2779_v3 = vld [vmem:[%s3847_s2 + $0x78] sm:$0xff]  ;;  %s2724_s23 = smov 32   ;;  %vm461_vm2 = vcmask 261120   ;;  %vm190_vm3 = vcmask 523264  }
   0x2   :  { %2267 = vmatprep.subr.mxu0 %v56_v0  ;;  %v54_v4 = vld [vmem:[%s3846_s3 + $0x58] sm:$0xff]  ;;  %210 = vmatprep.subr.mxu1 %v2779_v3  ;;  %v2788_v5 = vld [vmem:[%s3847_s2 + $0x70] sm:$0xff]  ;;  %v2793_v6 = vld [vmem:[%s3847_s2 + $0x68] sm:$0xff]  ;;  %v3038_v49 = vshrl.u32 %v154_v47, 7  ;;  %s2732_s10 = smov 96   ;;  %vm2104_vm4 = vcmask 7168  }
   0x3   :  { %2268 = vmatpush3.msra.mxu0 %v56_v0  ;;  %211 = vmatpush1.msra.mxu1 %v2788_v5  ;;  %v2799_v7 = vld [vmem:[%s3847_s2 + $0x60] sm:$0xff]  ;;  %v2804_v8 = vld [vmem:[%s3847_s2 + $0x58] sm:$0xff]  ;;  %v53_v9 = vld [vmem:[%s3846_s3 + $0x50] sm:$0xff] }
   0x4   :  { %2269 = vmatprep.subr.mxu0 %v55_v1  ;;  %212 = vmatprep.subr.mxu1 %v2793_v6  ;;  %v2813_v10 = vld [vmem:[%s3847_s2 + $0x50] sm:$0xff]  ;;  %v2819_v11 = vld [vmem:[%s3847_s2 + $0x48] sm:$0xff]  ;;  %v2828_v13 = vld [vmem:[%s3847_s2 + $0x40] sm:$0xff]  ;;  %v156_v51 = vsub.s32 0, %v3038_v49 }
   0x5   :  { %2270 = vmatpush3.msra.mxu0 %v55_v1  ;;  %213 = vmatpush1.msra.mxu1 %v2799_v7  ;;  %v52_v12 = vld [vmem:[%s3846_s3 + $0x48] sm:$0xff]  ;;  %v2834_v14 = vld [vmem:[%s3847_s2 + $0x38] sm:$0xff]  ;;  %v51_v15 = vld [vmem:[%s3846_s3 + $0x40] sm:$0xff] }
   0x6   :  { %2271 = vmatprep.subr.mxu0 %v54_v4  ;;  %214 = vmatprep.subr.mxu1 %v2804_v8  ;;  %v2843_v16 = vld [vmem:[%s3847_s2 + $0x30] sm:$0xff]  ;;  %v2849_v17 = vld [vmem:[%s3847_s2 + $0x28] sm:$0xff]  ;;  %v50_v18 = vld [vmem:[%s3846_s3 + $0x38] sm:$0xff] }
   0x7   :  { %2272 = vmatpush3.msra.mxu0 %v54_v4  ;;  %215 = vmatpush1.msra.mxu1 %v2813_v10  ;;  %v2858_v19 = vld [vmem:[%s3847_s2 + $0x20] sm:$0xff]  ;;  %v2864_v20 = vld [vmem:[%s3847_s2 + $0x18] sm:$0xff]  ;;  %v49_v21 = vld [vmem:[%s3846_s3 + $0x30] sm:$0xff] }
   0x8   :  { %2273 = vmatprep.subr.mxu0 %v53_v9  ;;  %216 = vmatprep.subr.mxu1 %v2819_v11  ;;  %v2873_v22 = vld [vmem:[%s3847_s2 + $0x10] sm:$0xff]  ;;  %v2879_v23 = vld [vmem:[%s3847_s2 + $0x8] sm:$0xff]  ;;  %v2888_v25 = vld [vmem:[%s3847_s2] sm:$0xff] }
   0x9   :  { %2274 = vmatpush3.msra.mxu0 %v53_v9  ;;  %217 = vmatpush1.msra.mxu1 %v2828_v13  ;;  %v48_v24 = vld [vmem:[%s3846_s3 + $0x28] sm:$0xff]  ;;  %v47_v26 = vld [vmem:[%s3846_s3 + $0x20] sm:$0xff]  ;;  %v46_v28 = vld [vmem:[%s3846_s3 + $0x18] sm:$0xff] }
   0xa   :  { %2275 = vmatprep.subr.mxu0 %v52_v12  ;;  %218 = vmatprep.subr.mxu1 %v2834_v14  ;;  %v23_v27 = vld [vmem:[%s3848_s0] sm:$0xff]  ;;  %v2906_v29 = vld [vmem:[%s3849_s4 + $0x68] sm:$0xff]  ;;  %v45_v30 = vld [vmem:[%s3846_s3 + $0x10] sm:$0xff] }
   0xb   :  { %2276 = vmatpush3.msra.mxu0 %v52_v12  ;;  %219 = vmatpush1.msra.mxu1 %v2843_v16  ;;  %v44_v31 = vld [vmem:[%s3846_s3 + $0x8] sm:$0xff]  ;;  %v43_v32 = vld [vmem:[%s3846_s3] sm:$0xff]  ;;  %v2954_v35 = vld [vmem:[%s3849_s4 + $0x58] sm:$0xff] }
   0xc   :  { %2277 = vmatprep.subr.mxu0 %v51_v15  ;;  %220 = vmatprep.subr.mxu1 %v2849_v17  ;;  %v24_v33 = vld [vmem:[%s3848_s0 + $0x8] sm:$0xff]  ;;  %v2947_v34 = vld [vmem:[%s3849_s4 + $0x60] sm:$0xff]  ;;  %v2961_v36 = vld [vmem:[%s3849_s4 + $0x50] sm:$0xff] }
   0xd   :  { %2278 = vmatpush3.msra.mxu0 %v51_v15  ;;  %221 = vmatpush1.msra.mxu1 %v2858_v19  ;;  %v2968_v37 = vld [vmem:[%s3849_s4 + $0x48] sm:$0xff]  ;;  %v2975_v38 = vld [vmem:[%s3849_s4 + $0x40] sm:$0xff]  ;;  %v2982_v39 = vld [vmem:[%s3849_s4 + $0x38] sm:$0xff] }
   0xe   :  { %2279 = vmatprep.subr.mxu0 %v50_v18  ;;  %222 = vmatprep.subr.mxu1 %v2864_v20  ;;  %v2989_v40 = vld [vmem:[%s3849_s4 + $0x30] sm:$0xff]  ;;  %v2994_v41 = vld [vmem:[%s3849_s4 + $0x28] sm:$0xff]  ;;  %v3001_v42 = vld [vmem:[%s3849_s4 + $0x20] sm:$0xff] }
   0xf   :  { %2280 = vmatpush3.msra.mxu0 %v50_v18  ;;  %223 = vmatpush1.msra.mxu1 %v2873_v22  ;;  %v3008_v43 = vld [vmem:[%s3849_s4 + $0x18] sm:$0xff]  ;;  %v3015_v44 = vld [vmem:[%s3849_s4 + $0x10] sm:$0xff]  ;;  %v3022_v45 = vld [vmem:[%s3849_s4 + $0x8] sm:$0xff] }
  0x10   :  { %2281 = vmatprep.subr.mxu0 %v49_v21  ;;  %224 = vmatprep.subr.mxu1 %v2879_v23  ;;  %v3029_v46 = vld [vmem:[%s3849_s4] sm:$0xff] }
  0x11   :  { %2282 = vmatpush3.msra.mxu0 %v49_v21  ;;  %225 = vmatpush1.msra.mxu1 %v2888_v25  ;;  %v3044_v52 = vld [vmem:[%s3850_s5] sm:$0xff] }
  0x12   :  { %2283 = vmatprep.subr.mxu0 %v48_v24  ;;  %259 = vmatmul.mubr.f32.vlgmr.msra.gmra.mxu1 %v2719_v2  ;;  %v157_v53 = vrot.slane %v3044_v52, %v156_v51  ;;  %v161_v12 = vrot.slane %v3044_v52, 6 }
  0x13   :  { %2284 = vmatpush3.msra.mxu0 %v48_v24  ;;  %2295 = vmatprep.mubr.msk.f32.mxu0 %vm72_vm0, %v23_v27 }
  0x14   :  { %2285 = vmatprep.subr.mxu0 %v47_v26  ;;  %264 = vmatprep.mubr.f32.mxu1 %v2719_v2  ;;  %2515 = vpush %v161_v12 }
  0x15   :  { %2286 = vmatpush3.msra.mxu0 %v47_v26  ;;  %2298 = vmatprep.subr.mxu1 %v2906_v29 }
  0x16   :  { %2287 = vmatprep.subr.mxu0 %v46_v28  ;;  %265 = vmatmul.mubr.f32.gmra.mxu1 %v2719_v2 }
  0x17   :  { %2288 = vmatpush3.msra.mxu0 %v46_v28  ;;  %2299 = vmatpush3.msra.mxu1 %v2906_v29 }
  0x18   :  { %2289 = vmatprep.subr.mxu0 %v45_v30  ;;  %2300 = vmatprep.subr.mxu1 %v2947_v34 }
  0x19   :  { %2290 = vmatpush3.msra.mxu0 %v45_v30  ;;  %2301 = vmatpush3.msra.mxu1 %v2947_v34 }
  0x1a   :  { %2291 = vmatprep.subr.mxu0 %v44_v31  ;;  %2302 = vmatprep.subr.mxu1 %v2954_v35 }
  0x1b   :  { %2292 = vmatpush3.msra.mxu0 %v44_v31  ;;  %2303 = vmatpush3.msra.mxu1 %v2954_v35 }
  0x1c   :  { %2293 = vmatprep.subr.mxu0 %v43_v32  ;;  %2304 = vmatprep.subr.mxu1 %v2961_v36 }
  0x1d   :  { %2294 = vmatpush3.msra.mxu0 %v43_v32  ;;  %2305 = vmatpush3.msra.mxu1 %v2961_v36 }
  0x1e   :  { %2296 = vmatmul.mubr.msk.f32.vlgmr.msra.gmra.mxu0 %vm72_vm0, %v24_v33  ;;  %486 = vmatprep.subr.mxu0 %v2779_v3 }
  0x1f   :  { %487 = vmatpush1.msra.mxu0 %v2788_v5  ;;  %534 = vmatprep.mubr.f32.mxu0 %v2719_v2 }
  0x20   :  { %488 = vmatprep.subr.mxu0 %v2793_v6  ;;  %2306 = vmatprep.subr.mxu1 %v2968_v37 }
  0x21   :  { %489 = vmatpush1.msra.mxu0 %v2799_v7  ;;  %2307 = vmatpush3.msra.mxu1 %v2968_v37 }
  0x22   :  { %490 = vmatprep.subr.mxu0 %v2804_v8  ;;  %2308 = vmatprep.subr.mxu1 %v2975_v38 }
  0x23   :  { %491 = vmatpush1.msra.mxu0 %v2813_v10  ;;  %2309 = vmatpush3.msra.mxu1 %v2975_v38 }
  0x24   :  { %492 = vmatprep.subr.mxu0 %v2819_v11  ;;  %2310 = vmatprep.subr.mxu1 %v2982_v39 }
  0x25   :  { %493 = vmatpush1.msra.mxu0 %v2828_v13  ;;  %2311 = vmatpush3.msra.mxu1 %v2982_v39 }
  0x26   :  { %494 = vmatprep.subr.mxu0 %v2834_v14  ;;  %2312 = vmatprep.subr.mxu1 %v2989_v40 }
  0x27   :  { %495 = vmatpush1.msra.mxu0 %v2843_v16  ;;  %2313 = vmatpush3.msra.mxu1 %v2989_v40 }
  0x28   :  { %496 = vmatprep.subr.mxu0 %v2849_v17  ;;  %2314 = vmatprep.subr.mxu1 %v2994_v41 }
  0x29   :  { %497 = vmatpush1.msra.mxu0 %v2858_v19  ;;  %2315 = vmatpush3.msra.mxu1 %v2994_v41 }
  0x2a   :  { %498 = vmatprep.subr.mxu0 %v2864_v20  ;;  %2316 = vmatprep.subr.mxu1 %v3001_v42 }
  0x2b   :  { %499 = vmatpush1.msra.mxu0 %v2873_v22  ;;  %2317 = vmatpush3.msra.mxu1 %v3001_v42 }
  0x2c   :  { %500 = vmatprep.subr.mxu0 %v2879_v23  ;;  %2318 = vmatprep.subr.mxu1 %v3008_v43 }
  0x2d   :  { %501 = vmatpush1.msra.mxu0 %v2888_v25  ;;  %2319 = vmatpush3.msra.mxu1 %v3008_v43 }
  0x2e   :  { %2329 = vmatprep.subr.mxu0 %v2906_v29  ;;  %2320 = vmatprep.subr.mxu1 %v3015_v44 }
  0x2f   :  { %2321 = vmatpush3.msra.mxu1 %v3015_v44 }
  0x30   :  { %2322 = vmatprep.subr.mxu1 %v3022_v45 }
  0x31   :  { %2323 = vmatpush3.msra.mxu1 %v3022_v45 }
  0x32   :  { %2324 = vmatprep.subr.mxu1 %v3029_v46 }
  0x33   :  { %2325 = vmatpush3.msra.mxu1 %v3029_v46 }
  0x34   :  { %752 = vmatprep.subr.mxu1 %v2779_v3 }
  0x45   :  { %s2516_s17 = spop %2515 }
  0xd2   :  { %v3036_v48 = vpop.f32.mrf.mxu1 }
  0xd4   :  { %v262_v50 = vpop.f32.mrf.mxu1 }
  0xd6   :  { %v3047_v54 = vpop.f32.mrf.mxu1 }
  0xd8   :  { %v268_v57 = vpop.f32.mrf.mxu1 }
  0xde   :  { %v3049_v55 = vpop.f32.mrf.mxu0 }
  0xdf   :  { %v3052_v56 = vadd.f32 %v3049_v55, %v157_v53 }
  0xe0   :  { %v3054_v58 = vpop.f32.mrf.mxu0 }
  0xe1   :  { %v3057_v59 = vadd.f32 %v157_v53, %v3054_v58  ;;  %v272_v60 = vadd.f32 %v268_v57, %v3052_v56 }
  0xe3   :  { %v271_v61 = vadd.f32 %v262_v50, %v3057_v59 }
  0xe5   :  { %2548 = vtanh.f32 %v271_v61 }
  0xe6   :  { %2550 = vtanh.f32 %v272_v60 }
  0xf2   :  { %v2549_v62 = vpop.eup %2548 }
  0xf3   :  { %v2551_v63 = vpop.eup %2550  ;;  %2326 = vmatprep.mubr.msk.f32.mxu1 %vm72_vm0, %v2549_v62 }
  0xf4   :  { %2327 = vmatmul.mubr.msk.f32.vlgmr.msra.gmra.mxu1 %vm72_vm0, %v2551_v63 }
  0xf5   :  { %753 = vmatpush1.msra.mxu1 %v2788_v5  ;;  %800 = vmatprep.mubr.f32.mxu1 %v2719_v2 }
  0xf6   :  { %754 = vmatprep.subr.mxu1 %v2793_v6 }
  0xf7   :  { %755 = vmatpush1.msra.mxu1 %v2799_v7 }
  0xf8   :  { %756 = vmatprep.subr.mxu1 %v2804_v8 }
  0xf9   :  { %757 = vmatpush1.msra.mxu1 %v2813_v10 }
  0xfa   :  { %758 = vmatprep.subr.mxu1 %v2819_v11 }
  0xfb   :  { %759 = vmatpush1.msra.mxu1 %v2828_v13 }
  0xfc   :  { %760 = vmatprep.subr.mxu1 %v2834_v14 }
  0xfd   :  { %761 = vmatpush1.msra.mxu1 %v2843_v16 }
  0xfe   :  { %762 = vmatprep.subr.mxu1 %v2849_v17 }
  0xff   :  { %763 = vmatpush1.msra.mxu1 %v2858_v19 }
 0x100   :  { %764 = vmatprep.subr.mxu1 %v2864_v20 }
 0x101   :  { %765 = vmatpush1.msra.mxu1 %v2873_v22 }
 0x102   :  { %766 = vmatprep.subr.mxu1 %v2879_v23 }
 0x103   :  { %767 = vmatpush1.msra.mxu1 %v2888_v25 }
 0x104   :  { %2360 = vmatprep.subr.mxu1 %v2906_v29 }
 0x1b4   :  { %v2328_v0 = vpop.f32.mrf.mxu1 }
 0x1b5   :  { %v360_v9 = vsel %vm356_vm1, %v2328_v0, -inf }
 0x1b6   :  { %v347_v1 = vpop.f32.mrf.mxu1 }
 0x1b7   :  { %v357_v4 = vsel %vm356_vm1, %v347_v1, -inf }
 0x1b8   :  { %358 = vmax.xlane.f32.xlu0 %v357_v4 }
 0x1bc   :  { %361 = vmax.xlane.f32.xlu0 %v360_v9  ;;  %v2722_v9 = vmov 0  }
 0x1bd   :  { %2535 = vset.pattern.permute.xlu1 %v2722_v9  ;;  %2534 = vset.pattern.permute.xlu0 %v2722_v9 }
 0x1d2   :  { %381 = vrot.lane.b32.xlu0 %v3054_v58, %s2720_s15 }
 0x241   :  { %v359_v15 = vpop.xlane.xlu0 %358 }
 0x242   :  { %v363_v18 = vsub.f32 %v347_v1, %v359_v15  ;;  %v163_v15 = vstv %s2516_s17 }
 0x244   :  { %v365_v26 = vmul.f32 1.442695, %v363_v18 }
 0x245   :  { %v362_v21 = vpop.xlane.xlu0 %361 }
 0x246   :  { %v364_v24 = vsub.f32 %v2328_v0, %v362_v21  ;;  %v25_v21 = vld [vmem:[%s3851_s1] sm:$0xff] }
 0x248   :  { %v367_v27 = vmul.f32 1.442695, %v364_v24 }
 0x249   :  { %v3091_v0 = vpop.permute.xlu0 %381 }
 0x24a   :  { %2552 = vpow2.f32 %v367_v27 }
 0x24b   :  { %2554 = vpow2.f32 %v365_v26  ;;  %v165_v26 = vmul.f32 %v163_v15, %v25_v21 }
 0x257   :  { %v2553_v28 = vpop.eup %2552 }
 0x258   :  { %v372_v30 = vsel %vm356_vm1, %v2553_v28, 0.0  ;;  %v2555_v31 = vpop.eup %2554 }
 0x259   :  { %373 = vadd.xlane.f32.xlu1 %v372_v30  ;;  %v369_v32 = vsel %vm356_vm1, %v2555_v31, 0.0 }
 0x25d   :  { %370 = vadd.xlane.f32.xlu1 %v369_v32 }
 0x26e   :  { %383 = vrot.lane.b32.xlu1 %v3049_v55, %s2720_s15 }
 0x272   :  { %167 = vrot.lane.b32.xlu1 %v161_v12, %s2721_s16  ;;  %v26_v12 = vld [vmem:[%s3851_s1 + $0x8] sm:$0xff]  ;;  %s2723_s1 = smov 64  }
 0x273   :  { %v166_v18 = vmul.f32 %v163_v15, %v26_v12  ;;  %v184_v15 = vsub.s32 3, %v3038_v49 }
 0x2e2   :  { %v374_v33 = vpop.xlane.xlu1 %373 }
 0x2e3   :  { %2556 = vrcp.f32 %v374_v33 }
 0x2e6   :  { %v371_v47 = vpop.xlane.xlu1 %370 }
 0x2e7   :  { %2558 = vrcp.f32 %v371_v47  ;;  %v176_v47 = vsub.s32 1, %v3038_v49 }
 0x2ea   :  { %v3087_v50 = vpop.permute.xlu1 %383 }
 0x2ee   :  { %v168_v51 = vpop.permute.xlu1 %167 }
 0x2ef   :  { %2517 = vpush %v168_v51  ;;  %v3109_v51 = vrot.slane %v3044_v52, %v176_v47 }
 0x2f0   :  { %v2557_v53 = vpop.eup %2556 }
 0x2f1   :  { %v378_v57 = vmul.f32 %v2557_v53, %v2553_v28  ;;  %v180_v53 = vsub.s32 2, %v3038_v49 }
 0x2f3   :  { %v388_v60 = vmul.f32 %v3087_v50, %v378_v57 }
 0x2f4   :  { %v2559_v61 = vpop.eup %2558 }
 0x2f5   :  { %v392_v62 = vsel %vm356_vm1, %v388_v60, 0.0  ;;  %v376_v63 = vmul.f32 %v2559_v61, %v2555_v31  ;;  %v3114_v61 = vrot.slane %v3044_v52, %v180_v53 }
 0x2f6   :  { %393 = vadd.xlane.f32.xlu0 %v392_v62 }
 0x2f7   :  { %v387_v1 = vmul.f32 %v3091_v0, %v376_v63 }
 0x2f9   :  { %v389_v4 = vsel %vm356_vm1, %v387_v1, 0.0 }
 0x2fa   :  { %390 = vadd.xlane.f32.xlu1 %v389_v4 }
 0x320   :  { %s2518_s20 = spop %2517 }
 0x321   :  { %v170_v24 = vstv %s2518_s20 }
 0x322   :  { %v3101_v27 = vadd.f32 %v170_v24, %v166_v18  ;;  %v3104_v31 = vadd.f32 %v170_v24, %v165_v26  ;;  %v188_v18 = vsub.s32 4, %v3038_v49  ;;  %v3124_v24 = vrot.slane %v3044_v52, %v184_v15 }
 0x324   :  { %v3127_v26 = vrot.slane %v3044_v52, %v188_v18 }
 0x37f   :  { %v394_v28 = vpop.xlane.xlu0 %393 }
 0x380   :  { %v396_v30 = vadd.f32 %v394_v28, %v3101_v27 }
 0x382   :  { %404 = vperm.xlu1 %2535, %v396_v30  }
 0x383   :  { %v391_v32 = vpop.xlane.xlu1 %390 }
 0x384   :  { %v395_v33 = vadd.f32 %v391_v32, %v3104_v31 }
 0x386   :  { %399 = vperm.xlu0 %2534, %v395_v33  }
 0x3fd   :  { %v405_v57 = vpop.permute.xlu1 %404 }
 0x3fe   :  { %v408_v60 = vmul.f32 %v405_v57, %v3109_v51 }
 0x400   :  { %v410_v62 = vadd.f32 %v408_v60, %v3047_v54 }
 0x401   :  { %v400_v63 = vpop.permute.xlu0 %399 }
 0x402   :  { %v407_v1 = vmul.f32 %v400_v63, %v3109_v51  ;;  %v412_v4 = vadd.f32 %v410_v62, %v3114_v61 }
 0x404   :  { %v409_v9 = vadd.f32 %v407_v1, %v3036_v48  ;;  %2560 = vtanh.f32 %v412_v4 }
 0x406   :  { %v411_v12 = vadd.f32 %v409_v9, %v3114_v61 }
 0x408   :  { %2562 = vtanh.f32 %v411_v12 }
 0x411   :  { %v2561_v21 = vpop.eup %2560 }
 0x412   :  { %v416_v30 = vmul.f32 %v2561_v21, %v3124_v24 }
 0x414   :  { %v418_v32 = vadd.f32 %v416_v30, %v3127_v26 }
 0x415   :  { %v2563_v54 = vpop.eup %2562 }
 0x416   :  { %v415_v28 = vmul.f32 %v2563_v54, %v3124_v24  ;;  %v420_v63 = vmul.f32 0.0, %v418_v32 }
 0x418   :  { %v417_v48 = vadd.f32 %v415_v28, %v3127_v26 }
 0x41a   :  { %423 = vrot.lane.b32.xlu1 %v417_v48, %s2723_s1  ;;  %v419_v57 = vmul.f32 0.0, %v417_v48 }
 0x41e   :  { %425 = vrot.lane.b32.xlu1 %v418_v32, %s2723_s1 }
 0x48c   :  { %v424_v33 = vpop.permute.xlu1 %423 }
 0x48d   :  { %v429_v47 = vmul.f32 %v424_v33, %v417_v48 }
 0x48f   :  { %433 = vrot.lane.b32.xlu1 %v429_v47, %s2724_s23 }
 0x490   :  { %v426_v52 = vpop.permute.xlu1 %425 }
 0x491   :  { %v430_v53 = vmul.f32 %v426_v52, %v418_v32 }
 0x493   :  { %435 = vrot.lane.b32.xlu1 %v430_v53, %s2724_s23 }
 0x501   :  { %v434_v60 = vpop.permute.xlu1 %433 }
 0x502   :  { %v3137_v62 = vadd.f32 %v434_v60, %v419_v57 }
 0x504   :  { %2564 = vtanh.f32 %v3137_v62 }
 0x505   :  { %v436_v1 = vpop.permute.xlu1 %435 }
 0x506   :  { %v3140_v4 = vadd.f32 %v436_v1, %v420_v63 }
 0x508   :  { %2566 = vtanh.f32 %v3140_v4 }
 0x511   :  { %v2565_v9 = vpop.eup %2564 }
 0x512   :  { %445 = vrot.lane.b32.xlu1 %v2565_v9, %s2723_s1 }
 0x515   :  { %v2567_v12 = vpop.eup %2566 }
 0x516   :  { %447 = vrot.lane.b32.xlu1 %v2567_v12, %s2723_s1 }
 0x584   :  { %v446_v15 = vpop.permute.xlu1 %445 }
 0x585   :  { %v451_v18 = vmul.f32 %v446_v15, %v417_v48 }
 0x587   :  { %455 = vrot.lane.b32.xlu0 %v451_v18, %s2724_s23 }
 0x588   :  { %v448_v21 = vpop.permute.xlu1 %447 }
 0x589   :  { %v452_v54 = vmul.f32 %v448_v21, %v418_v32 }
 0x58b   :  { %457 = vrot.lane.b32.xlu1 %v452_v54, %s2724_s23 }
 0x5f9   :  { %v456_v28 = vpop.permute.xlu0 %455 }
 0x5fa   :  { %v462_v30 = vsel %vm461_vm2, %v456_v28, %v3137_v62 }
 0x5fb   :  { %2115 = vmatmul.mubr.msk.f32.vlgmr.msra.gmra.mxu0 %vm190_vm3, %v462_v30 }
 0x5fc   :  { %540 = vmatprep.mubr.f32.mxu0 %v2719_v2  ;;  %2330 = vmatpush3.msra.mxu0 %v2906_v29 }
 0x5fd   :  { %v458_v33 = vpop.permute.xlu1 %457  ;;  %2331 = vmatprep.subr.mxu0 %v2947_v34 }
 0x5fe   :  { %v463_v48 = vsel %vm461_vm2, %v458_v33, %v3140_v4  ;;  %2332 = vmatpush3.msra.mxu0 %v2947_v34 }
 0x5ff   :  { %2116 = vmatmul.mubr.msk.f32.gmra.mxu0 %vm190_vm3, %v463_v48  ;;  %2333 = vmatprep.subr.mxu0 %v2954_v35 }
 0x600   :  { %2334 = vmatpush3.msra.mxu0 %v2954_v35 }
 0x601   :  { %2335 = vmatprep.subr.mxu0 %v2961_v36 }
 0x602   :  { %2336 = vmatpush3.msra.mxu0 %v2961_v36 }
 0x603   :  { %2337 = vmatprep.subr.mxu0 %v2968_v37 }
 0x604   :  { %2338 = vmatpush3.msra.mxu0 %v2968_v37 }
 0x605   :  { %2339 = vmatprep.subr.mxu0 %v2975_v38 }
 0x606   :  { %2340 = vmatpush3.msra.mxu0 %v2975_v38 }
 0x607   :  { %2341 = vmatprep.subr.mxu0 %v2982_v39 }
 0x608   :  { %2342 = vmatpush3.msra.mxu0 %v2982_v39 }
 0x609   :  { %2343 = vmatprep.subr.mxu0 %v2989_v40 }
 0x60a   :  { %2344 = vmatpush3.msra.mxu0 %v2989_v40 }
 0x60b   :  { %2345 = vmatprep.subr.mxu0 %v2994_v41 }
 0x60c   :  { %2346 = vmatpush3.msra.mxu0 %v2994_v41 }
 0x60d   :  { %2347 = vmatprep.subr.mxu0 %v3001_v42 }
 0x60e   :  { %2348 = vmatpush3.msra.mxu0 %v3001_v42 }
 0x60f   :  { %2349 = vmatprep.subr.mxu0 %v3008_v43 }
 0x610   :  { %2350 = vmatpush3.msra.mxu0 %v3008_v43 }
 0x611   :  { %2351 = vmatprep.subr.mxu0 %v3015_v44 }
 0x612   :  { %2352 = vmatpush3.msra.mxu0 %v3015_v44 }
 0x613   :  { %2353 = vmatprep.subr.mxu0 %v3022_v45 }
 0x614   :  { %2354 = vmatpush3.msra.mxu0 %v3022_v45 }
 0x615   :  { %2355 = vmatprep.subr.mxu0 %v3029_v46 }
 0x616   :  { %2356 = vmatpush3.msra.mxu0 %v3029_v46 }
 0x617   :  { %1018 = vmatprep.subr.mxu0 %v2779_v3 }
 0x6bb   :  { %v3182_v32 = vpop.f32.mrf.mxu0 }
 0x6bd   :  { %v538_v47 = vpop.f32.mrf.mxu0 }
 0x6be   :  { %v547_v52 = vadd.f32 %v538_v47, %v3057_v59 }
 0x6bf   :  { %v3185_v53 = vpop.f32.mrf.mxu0 }
 0x6c0   :  { %2568 = vtanh.f32 %v547_v52 }
 0x6c1   :  { %v544_v57 = vpop.f32.mrf.mxu0 }
 0x6c2   :  { %v548_v60 = vadd.f32 %v544_v57, %v3052_v56 }
 0x6c4   :  { %2570 = vtanh.f32 %v548_v60 }
 0x6cd   :  { %v2569_v63 = vpop.eup %2568 }
 0x6ce   :  { %2357 = vmatprep.mubr.msk.f32.mxu0 %vm72_vm0, %v2569_v63 }
 0x6d1   :  { %v2571_v1 = vpop.eup %2570 }
 0x6d2   :  { %2358 = vmatmul.mubr.msk.f32.vlgmr.msra.gmra.mxu0 %vm72_vm0, %v2571_v1 }
 0x6d3   :  { %1019 = vmatpush1.msra.mxu0 %v2788_v5  ;;  %1066 = vmatprep.mubr.f32.mxu0 %v2719_v2 }
 0x6d4   :  { %1020 = vmatprep.subr.mxu0 %v2793_v6 }
 0x6d5   :  { %1021 = vmatpush1.msra.mxu0 %v2799_v7 }
 0x6d6   :  { %1022 = vmatprep.subr.mxu0 %v2804_v8 }
 0x6d7   :  { %1023 = vmatpush1.msra.mxu0 %v2813_v10 }
 0x6d8   :  { %1024 = vmatprep.subr.mxu0 %v2819_v11 }
 0x6d9   :  { %1025 = vmatpush1.msra.mxu0 %v2828_v13 }
 0x6da   :  { %1026 = vmatprep.subr.mxu0 %v2834_v14 }
 0x6db   :  { %1027 = vmatpush1.msra.mxu0 %v2843_v16 }
 0x6dc   :  { %1028 = vmatprep.subr.mxu0 %v2849_v17 }
 0x6dd   :  { %1029 = vmatpush1.msra.mxu0 %v2858_v19 }
 0x6de   :  { %1030 = vmatprep.subr.mxu0 %v2864_v20 }
 0x6df   :  { %1031 = vmatpush1.msra.mxu0 %v2873_v22 }
 0x6e0   :  { %1032 = vmatprep.subr.mxu0 %v2879_v23 }
 0x6e1   :  { %1033 = vmatpush1.msra.mxu0 %v2888_v25 }
 0x6e2   :  { %2391 = vmatprep.subr.mxu0 %v2906_v29 }
 0x792   :  { %v2359_v9 = vpop.f32.mrf.mxu0 }
 0x793   :  { %v635_v12 = vsel %vm356_vm1, %v2359_v9, -inf }
 0x794   :  { %636 = vmax.xlane.f32.xlu1 %v635_v12  ;;  %v623_v15 = vpop.f32.mrf.mxu0 }
 0x795   :  { %v632_v18 = vsel %vm356_vm1, %v623_v15, -inf }
 0x796   :  { %633 = vmax.xlane.f32.xlu0 %v632_v18 }
 0x81d   :  { %v637_v21 = vpop.xlane.xlu1 %636 }
 0x81e   :  { %v639_v54 = vsub.f32 %v2359_v9, %v637_v21 }
 0x81f   :  { %v634_v28 = vpop.xlane.xlu0 %633 }
 0x820   :  { %v638_v30 = vsub.f32 %v623_v15, %v634_v28  ;;  %v642_v33 = vmul.f32 1.442695, %v639_v54 }
 0x822   :  { %v640_v48 = vmul.f32 1.442695, %v638_v30 }
 0x824   :  { %2572 = vpow2.f32 %v640_v48 }
 0x825   :  { %2574 = vpow2.f32 %v642_v33  ;;  %v2725_v33 = vmov 1  }
 0x826   :  { %2536 = vset.pattern.permute.xlu1 %v2725_v33  ;;  %2537 = vset.pattern.permute.xlu0 %v2725_v33 }
 0x831   :  { %v2573_v47 = vpop.eup %2572 }
 0x832   :  { %v644_v52 = vsel %vm356_vm1, %v2573_v47, 0.0  ;;  %v2575_v57 = vpop.eup %2574 }
 0x833   :  { %645 = vadd.xlane.f32.xlu0 %v644_v52  ;;  %v647_v60 = vsel %vm356_vm1, %v2575_v57, 0.0 }
 0x837   :  { %648 = vadd.xlane.f32.xlu0 %v647_v60 }
 0x8bc   :  { %v646_v63 = vpop.xlane.xlu0 %645 }
 0x8bd   :  { %2576 = vrcp.f32 %v646_v63 }
 0x8c0   :  { %v649_v1 = vpop.xlane.xlu0 %648 }
 0x8c1   :  { %2578 = vrcp.f32 %v649_v1 }
 0x8ca   :  { %v2577_v12 = vpop.eup %2576 }
 0x8cb   :  { %v651_v9 = vmul.f32 %v2577_v12, %v2573_v47 }
 0x8cd   :  { %v654_v15 = vmul.f32 %v651_v9, %v3091_v0 }
 0x8ce   :  { %v2579_v18 = vpop.eup %2578 }
 0x8cf   :  { %v656_v21 = vsel %vm356_vm1, %v654_v15, 0.0  ;;  %v653_v54 = vmul.f32 %v2579_v18, %v2575_v57 }
 0x8d0   :  { %657 = vadd.xlane.f32.xlu1 %v656_v21 }
 0x8d1   :  { %v655_v28 = vmul.f32 %v653_v54, %v3087_v50 }
 0x8d3   :  { %v659_v30 = vsel %vm356_vm1, %v655_v28, 0.0 }
 0x8d4   :  { %660 = vadd.xlane.f32.xlu0 %v659_v30 }
 0x959   :  { %v658_v48 = vpop.xlane.xlu1 %657 }
 0x95a   :  { %v662_v52 = vadd.f32 %v658_v48, %v3104_v31 }
 0x95c   :  { %666 = vperm.xlu1 %2536, %v662_v52  }
 0x95d   :  { %v661_v47 = vpop.xlane.xlu0 %660 }
 0x95e   :  { %v663_v60 = vadd.f32 %v661_v47, %v3101_v27 }
 0x960   :  { %671 = vperm.xlu0 %2537, %v663_v60  }
 0x9d7   :  { %v667_v63 = vpop.permute.xlu1 %666 }
 0x9d8   :  { %v674_v57 = vmul.f32 %v667_v63, %v3109_v51 }
 0x9da   :  { %v676_v1 = vadd.f32 %v674_v57, %v3182_v32 }
 0x9db   :  { %v672_v12 = vpop.permute.xlu0 %671 }
 0x9dc   :  { %v678_v9 = vadd.f32 %v676_v1, %v3114_v61  ;;  %v675_v15 = vmul.f32 %v672_v12, %v3109_v51 }
 0x9de   :  { %2580 = vtanh.f32 %v678_v9  ;;  %v677_v18 = vadd.f32 %v675_v15, %v3185_v53 }
 0x9e0   :  { %v679_v21 = vadd.f32 %v677_v18, %v3114_v61 }
 0x9e2   :  { %2582 = vtanh.f32 %v679_v21 }
 0x9eb   :  { %v2581_v54 = vpop.eup %2580 }
 0x9ec   :  { %v682_v28 = vmul.f32 %v2581_v54, %v3124_v24 }
 0x9ee   :  { %v684_v30 = vadd.f32 %v682_v28, %v3127_v26 }
 0x9ef   :  { %v2583_v33 = vpop.eup %2582 }
 0x9f0   :  { %690 = vrot.lane.b32.xlu1 %v684_v30, %s2723_s1  ;;  %v683_v32 = vmul.f32 %v2583_v33, %v3124_v24  ;;  %v686_v63 = vmul.f32 %v684_v30, %v3137_v62 }
 0x9f2   :  { %v685_v48 = vadd.f32 %v683_v32, %v3127_v26 }
 0x9f4   :  { %692 = vrot.lane.b32.xlu1 %v685_v48, %s2723_s1  ;;  %v687_v12 = vmul.f32 %v685_v48, %v3140_v4 }
 0xa62   :  { %v691_v52 = vpop.permute.xlu1 %690 }
 0xa63   :  { %v696_v47 = vmul.f32 %v691_v52, %v684_v30 }
 0xa65   :  { %700 = vrot.lane.b32.xlu1 %v696_v47, %s2724_s23 }
 0xa66   :  { %v693_v53 = vpop.permute.xlu1 %692 }
 0xa67   :  { %v697_v60 = vmul.f32 %v693_v53, %v685_v48 }
 0xa69   :  { %702 = vrot.lane.b32.xlu1 %v697_v60, %s2724_s23 }
 0xad7   :  { %v701_v57 = vpop.permute.xlu1 %700 }
 0xad8   :  { %v3232_v1 = vadd.f32 %v701_v57, %v686_v63 }
 0xada   :  { %2584 = vtanh.f32 %v3232_v1 }
 0xadb   :  { %v703_v9 = vpop.permute.xlu1 %702 }
 0xadc   :  { %v3236_v15 = vadd.f32 %v703_v9, %v687_v12 }
 0xade   :  { %2586 = vtanh.f32 %v3236_v15 }
 0xae7   :  { %v2585_v18 = vpop.eup %2584 }
 0xae8   :  { %712 = vrot.lane.b32.xlu1 %v2585_v18, %s2723_s1 }
 0xaeb   :  { %v2587_v21 = vpop.eup %2586 }
 0xaec   :  { %714 = vrot.lane.b32.xlu1 %v2587_v21, %s2723_s1 }
 0xb5a   :  { %v713_v54 = vpop.permute.xlu1 %712 }
 0xb5b   :  { %v718_v62 = vmul.f32 %v713_v54, %v684_v30 }
 0xb5d   :  { %722 = vrot.lane.b32.xlu1 %v718_v62, %s2724_s23 }
 0xb5e   :  { %v715_v28 = vpop.permute.xlu1 %714 }
 0xb5f   :  { %v719_v33 = vmul.f32 %v715_v28, %v685_v48 }
 0xb61   :  { %724 = vrot.lane.b32.xlu1 %v719_v33, %s2724_s23 }
 0xbcf   :  { %v723_v4 = vpop.permute.xlu1 %722 }
 0xbd0   :  { %v728_v32 = vsel %vm461_vm2, %v723_v4, %v3232_v1 }
 0xbd1   :  { %2119 = vmatmul.mubr.msk.f32.vlgmr.msra.gmra.mxu1 %vm190_vm3, %v728_v32  ;;  %v2726_v32 = vmov 2  }
 0xbd2   :  { %806 = vmatprep.mubr.f32.mxu1 %v2719_v2  ;;  %2361 = vmatpush3.msra.mxu1 %v2906_v29 }
 0xbd3   :  { %v725_v52 = vpop.permute.xlu1 %724  ;;  %2362 = vmatprep.subr.mxu1 %v2947_v34  ;;  %2538 = vset.pattern.permute.xlu0 %v2726_v32 }
 0xbd4   :  { %v729_v30 = vsel %vm461_vm2, %v725_v52, %v3236_v15  ;;  %2363 = vmatpush3.msra.mxu1 %v2947_v34  ;;  %2539 = vset.pattern.permute.xlu1 %v2726_v32  ;;  %v3346_v32 = vld [vmem:[%s3849_s4 + $0x68] sm:$0xff] }
 0xbd5   :  { %2120 = vmatmul.mubr.msk.f32.gmra.mxu1 %vm190_vm3, %v729_v30  ;;  %2364 = vmatprep.subr.mxu1 %v2954_v35 }
 0xbd6   :  { %2365 = vmatpush3.msra.mxu1 %v2954_v35 }
 0xbd7   :  { %2366 = vmatprep.subr.mxu1 %v2961_v36 }
 0xbd8   :  { %2367 = vmatpush3.msra.mxu1 %v2961_v36 }
 0xbd9   :  { %2368 = vmatprep.subr.mxu1 %v2968_v37 }
 0xbda   :  { %2369 = vmatpush3.msra.mxu1 %v2968_v37 }
 0xbdb   :  { %2370 = vmatprep.subr.mxu1 %v2975_v38 }
 0xbdc   :  { %2371 = vmatpush3.msra.mxu1 %v2975_v38 }
 0xbdd   :  { %2372 = vmatprep.subr.mxu1 %v2982_v39 }
 0xbde   :  { %2373 = vmatpush3.msra.mxu1 %v2982_v39 }
 0xbdf   :  { %2374 = vmatprep.subr.mxu1 %v2989_v40 }
 0xbe0   :  { %2375 = vmatpush3.msra.mxu1 %v2989_v40 }
 0xbe1   :  { %2376 = vmatprep.subr.mxu1 %v2994_v41 }
 0xbe2   :  { %2377 = vmatpush3.msra.mxu1 %v2994_v41 }
 0xbe3   :  { %2378 = vmatprep.subr.mxu1 %v3001_v42 }
 0xbe4   :  { %2379 = vmatpush3.msra.mxu1 %v3001_v42 }
 0xbe5   :  { %2380 = vmatprep.subr.mxu1 %v3008_v43 }
 0xbe6   :  { %2381 = vmatpush3.msra.mxu1 %v3008_v43 }
 0xbe7   :  { %2382 = vmatprep.subr.mxu1 %v3015_v44 }
 0xbe8   :  { %2383 = vmatpush3.msra.mxu1 %v3015_v44 }
 0xbe9   :  { %2384 = vmatprep.subr.mxu1 %v3022_v45 }
 0xbea   :  { %2385 = vmatpush3.msra.mxu1 %v3022_v45 }
 0xbeb   :  { %2386 = vmatprep.subr.mxu1 %v3029_v46 }
 0xbec   :  { %2387 = vmatpush3.msra.mxu1 %v3029_v46 }
 0xbed   :  { %1284 = vmatprep.subr.mxu1 %v2779_v3 }
 0xc91   :  { %v3278_v48 = vpop.f32.mrf.mxu1 }
 0xc93   :  { %v804_v47 = vpop.f32.mrf.mxu1 }
 0xc94   :  { %v813_v53 = vadd.f32 %v804_v47, %v3057_v59 }
 0xc95   :  { %v3281_v60 = vpop.f32.mrf.mxu1 }
 0xc96   :  { %2588 = vtanh.f32 %v813_v53 }
 0xc97   :  { %v810_v63 = vpop.f32.mrf.mxu1 }
 0xc98   :  { %v814_v57 = vadd.f32 %v810_v63, %v3052_v56 }
 0xc9a   :  { %2590 = vtanh.f32 %v814_v57 }
 0xca3   :  { %v2589_v12 = vpop.eup %2588 }
 0xca4   :  { %2388 = vmatprep.mubr.msk.f32.mxu1 %vm72_vm0, %v2589_v12 }
 0xca7   :  { %v2591_v9 = vpop.eup %2590 }
 0xca8   :  { %2389 = vmatmul.mubr.msk.f32.vlgmr.msra.gmra.mxu1 %vm72_vm0, %v2591_v9 }
 0xca9   :  { %1285 = vmatpush1.msra.mxu1 %v2788_v5  ;;  %1332 = vmatprep.mubr.f32.mxu1 %v2719_v2 }
 0xcaa   :  { %1286 = vmatprep.subr.mxu1 %v2793_v6 }
 0xcab   :  { %1287 = vmatpush1.msra.mxu1 %v2799_v7 }
 0xcac   :  { %1288 = vmatprep.subr.mxu1 %v2804_v8 }
 0xcad   :  { %1289 = vmatpush1.msra.mxu1 %v2813_v10 }
 0xcae   :  { %1290 = vmatprep.subr.mxu1 %v2819_v11 }
 0xcaf   :  { %1291 = vmatpush1.msra.mxu1 %v2828_v13 }
 0xcb0   :  { %1292 = vmatprep.subr.mxu1 %v2834_v14 }
 0xcb1   :  { %1293 = vmatpush1.msra.mxu1 %v2843_v16 }
 0xcb2   :  { %1294 = vmatprep.subr.mxu1 %v2849_v17 }
 0xcb3   :  { %1295 = vmatpush1.msra.mxu1 %v2858_v19 }
 0xcb4   :  { %1296 = vmatprep.subr.mxu1 %v2864_v20 }
 0xcb5   :  { %1297 = vmatpush1.msra.mxu1 %v2873_v22 }
 0xcb6   :  { %1298 = vmatprep.subr.mxu1 %v2879_v23 }
 0xcb7   :  { %1299 = vmatpush1.msra.mxu1 %v2888_v25 }
 0xcb8   :  { %2422 = vmatprep.subr.mxu1 %v2906_v29 }
 0xd68   :  { %v2390_v3 = vpop.f32.mrf.mxu1 }
 0xd69   :  { %v901_v5 = vsel %vm356_vm1, %v2390_v3, -inf }
 0xd6a   :  { %902 = vmax.xlane.f32.xlu1 %v901_v5  ;;  %v889_v6 = vpop.f32.mrf.mxu1 }
 0xd6b   :  { %v898_v7 = vsel %vm356_vm1, %v889_v6, -inf }
 0xd6c   :  { %899 = vmax.xlane.f32.xlu0 %v898_v7 }
 0xdf3   :  { %v903_v8 = vpop.xlane.xlu1 %902 }
 0xdf4   :  { %v905_v10 = vsub.f32 %v2390_v3, %v903_v8 }
 0xdf5   :  { %v900_v11 = vpop.xlane.xlu0 %899 }
 0xdf6   :  { %v904_v13 = vsub.f32 %v889_v6, %v900_v11  ;;  %v908_v14 = vmul.f32 1.442695, %v905_v10 }
 0xdf8   :  { %v906_v16 = vmul.f32 1.442695, %v904_v13 }
 0xdfa   :  { %2592 = vpow2.f32 %v906_v16 }
 0xdfb   :  { %2594 = vpow2.f32 %v908_v14 }
 0xe07   :  { %v2593_v17 = vpop.eup %2592 }
 0xe08   :  { %v910_v19 = vsel %vm356_vm1, %v2593_v17, 0.0  ;;  %v2595_v20 = vpop.eup %2594 }
 0xe09   :  { %911 = vadd.xlane.f32.xlu0 %v910_v19  ;;  %v913_v22 = vsel %vm356_vm1, %v2595_v20, 0.0 }
 0xe0d   :  { %914 = vadd.xlane.f32.xlu0 %v913_v22 }
 0xe92   :  { %v912_v23 = vpop.xlane.xlu0 %911 }
 0xe93   :  { %2596 = vrcp.f32 %v912_v23 }
 0xe96   :  { %v915_v25 = vpop.xlane.xlu0 %914 }
 0xe97   :  { %2598 = vrcp.f32 %v915_v25 }
 0xea0   :  { %v2597_v29 = vpop.eup %2596 }
 0xea1   :  { %v917_v18 = vmul.f32 %v2597_v29, %v2593_v17 }
 0xea3   :  { %v920_v21 = vmul.f32 %v917_v18, %v3091_v0 }
 0xea4   :  { %v2599_v54 = vpop.eup %2598 }
 0xea5   :  { %v922_v62 = vsel %vm356_vm1, %v920_v21, 0.0  ;;  %v919_v28 = vmul.f32 %v2599_v54, %v2595_v20 }
 0xea6   :  { %923 = vadd.xlane.f32.xlu0 %v922_v62 }
 0xea7   :  { %v921_v33 = vmul.f32 %v919_v28, %v3087_v50 }
 0xea9   :  { %v925_v4 = vsel %vm356_vm1, %v921_v33, 0.0 }
 0xeaa   :  { %926 = vadd.xlane.f32.xlu1 %v925_v4 }
 0xf2f   :  { %v924_v52 = vpop.xlane.xlu0 %923 }
 0xf30   :  { %v928_v30 = vadd.f32 %v924_v52, %v3104_v31 }
 0xf32   :  { %932 = vperm.xlu0 %2538, %v928_v30  }
 0xf33   :  { %v927_v47 = vpop.xlane.xlu1 %926 }
 0xf34   :  { %v929_v53 = vadd.f32 %v927_v47, %v3101_v27  ;;  %v3420_v47 = vld [vmem:[%s3847_s2 + $0x50] sm:$0xff] }
 0xf36   :  { %937 = vperm.xlu1 %2539, %v929_v53   ;;  %v3426_v53 = vld [vmem:[%s3847_s2 + $0x48] sm:$0xff] }
 0xfad   :  { %v933_v63 = vpop.permute.xlu0 %932 }
 0xfae   :  { %v940_v57 = vmul.f32 %v933_v63, %v3109_v51  ;;  %v3432_v63 = vld [vmem:[%s3847_s2 + $0x40] sm:$0xff] }
 0xfb0   :  { %v942_v12 = vadd.f32 %v940_v57, %v3278_v48  ;;  %v3438_v57 = vld [vmem:[%s3847_s2 + $0x38] sm:$0xff] }
 0xfb1   :  { %v938_v9 = vpop.permute.xlu1 %937 }
 0xfb2   :  { %v944_v3 = vadd.f32 %v942_v12, %v3114_v61  ;;  %v941_v5 = vmul.f32 %v938_v9, %v3109_v51  ;;  %v3444_v12 = vld [vmem:[%s3847_s2 + $0x30] sm:$0xff]  ;;  %v3450_v9 = vld [vmem:[%s3847_s2 + $0x28] sm:$0xff] }
 0xfb4   :  { %2600 = vtanh.f32 %v944_v3  ;;  %v943_v6 = vadd.f32 %v941_v5, %v3281_v60  ;;  %v3456_v3 = vld [vmem:[%s3847_s2 + $0x20] sm:$0xff]  ;;  %v3462_v5 = vld [vmem:[%s3847_s2 + $0x18] sm:$0xff] }
 0xfb6   :  { %v945_v7 = vadd.f32 %v943_v6, %v3114_v61  ;;  %v3468_v6 = vld [vmem:[%s3847_s2 + $0x10] sm:$0xff] }
 0xfb8   :  { %2602 = vtanh.f32 %v945_v7  ;;  %v3474_v7 = vld [vmem:[%s3847_s2 + $0x8] sm:$0xff] }
 0xfc1   :  { %v2601_v8 = vpop.eup %2600 }
 0xfc2   :  { %v948_v10 = vmul.f32 %v2601_v8, %v3124_v24  ;;  %v3480_v8 = vld [vmem:[%s3847_s2] sm:$0xff] }
 0xfc4   :  { %v950_v11 = vadd.f32 %v948_v10, %v3127_v26 }
 0xfc5   :  { %v2603_v13 = vpop.eup %2602 }
 0xfc6   :  { %956 = vrot.lane.b32.xlu1 %v950_v11, %s2723_s1  ;;  %v949_v48 = vmul.f32 %v2603_v13, %v3124_v24  ;;  %v952_v20 = vmul.f32 %v950_v11, %v3232_v1 }
 0xfc8   :  { %v951_v14 = vadd.f32 %v949_v48, %v3127_v26 }
 0xfca   :  { %958 = vrot.lane.b32.xlu1 %v951_v14, %s2723_s1  ;;  %v953_v25 = vmul.f32 %v951_v14, %v3236_v15 }
0x1038   :  { %v957_v16 = vpop.permute.xlu1 %956 }
0x1039   :  { %v962_v17 = vmul.f32 %v957_v16, %v950_v11 }
0x103b   :  { %966 = vrot.lane.b32.xlu1 %v962_v17, %s2724_s23 }
0x103c   :  { %v959_v60 = vpop.permute.xlu1 %958 }
0x103d   :  { %v963_v19 = vmul.f32 %v959_v60, %v951_v14 }
0x103f   :  { %968 = vrot.lane.b32.xlu1 %v963_v19, %s2724_s23 }
0x10ad   :  { %v967_v22 = vpop.permute.xlu1 %966 }
0x10ae   :  { %v3328_v23 = vadd.f32 %v967_v22, %v952_v20 }
0x10b0   :  { %2604 = vtanh.f32 %v3328_v23 }
0x10b1   :  { %v969_v29 = vpop.permute.xlu1 %968 }
0x10b2   :  { %v3332_v18 = vadd.f32 %v969_v29, %v953_v25 }
0x10b4   :  { %2606 = vtanh.f32 %v3332_v18 }
0x10bd   :  { %v2605_v21 = vpop.eup %2604 }
0x10be   :  { %978 = vrot.lane.b32.xlu1 %v2605_v21, %s2723_s1 }
0x10c1   :  { %v2607_v54 = vpop.eup %2606 }
0x10c2   :  { %980 = vrot.lane.b32.xlu1 %v2607_v54, %s2723_s1 }
0x1130   :  { %v979_v62 = vpop.permute.xlu1 %978 }
0x1131   :  { %v984_v1 = vmul.f32 %v979_v62, %v950_v11 }
0x1133   :  { %988 = vrot.lane.b32.xlu1 %v984_v1, %s2724_s23 }
0x1134   :  { %v981_v28 = vpop.permute.xlu1 %980 }
0x1135   :  { %v985_v33 = vmul.f32 %v981_v28, %v951_v14 }
0x1137   :  { %990 = vrot.lane.b32.xlu0 %v985_v33, %s2724_s23 }
0x11a5   :  { %v989_v15 = vpop.permute.xlu1 %988 }
0x11a6   :  { %v994_v4 = vsel %vm461_vm2, %v989_v15, %v3328_v23 }
0x11a7   :  { %2123 = vmatmul.mubr.msk.f32.vlgmr.msra.gmra.mxu0 %vm190_vm3, %v994_v4 }
0x11a8   :  { %1072 = vmatprep.mubr.f32.mxu0 %v2719_v2  ;;  %2392 = vmatpush3.msra.mxu0 %v3346_v32 }
0x11a9   :  { %v991_v52 = vpop.permute.xlu0 %990  ;;  %2393 = vmatprep.subr.mxu0 %v2947_v34 }
0x11aa   :  { %v995_v30 = vsel %vm461_vm2, %v991_v52, %v3332_v18  ;;  %2394 = vmatpush3.msra.mxu0 %v2947_v34  ;;  %v3381_v34 = vld [vmem:[%s3847_s2 + $0x78] sm:$0xff] }
0x11ab   :  { %2124 = vmatmul.mubr.msk.f32.gmra.mxu0 %vm190_vm3, %v995_v30  ;;  %2395 = vmatprep.subr.mxu0 %v2954_v35 }
0x11ac   :  { %2396 = vmatpush3.msra.mxu0 %v2954_v35 }
0x11ad   :  { %2397 = vmatprep.subr.mxu0 %v2961_v36 }
0x11ae   :  { %2398 = vmatpush3.msra.mxu0 %v2961_v36 }
0x11af   :  { %2399 = vmatprep.subr.mxu0 %v2968_v37 }
0x11b0   :  { %2400 = vmatpush3.msra.mxu0 %v2968_v37 }
0x11b1   :  { %2401 = vmatprep.subr.mxu0 %v2975_v38 }
0x11b2   :  { %2402 = vmatpush3.msra.mxu0 %v2975_v38 }
0x11b3   :  { %2403 = vmatprep.subr.mxu0 %v2982_v39 }
0x11b4   :  { %2404 = vmatpush3.msra.mxu0 %v2982_v39 }
0x11b5   :  { %2405 = vmatprep.subr.mxu0 %v2989_v40 }
0x11b6   :  { %2406 = vmatpush3.msra.mxu0 %v2989_v40 }
0x11b7   :  { %2407 = vmatprep.subr.mxu0 %v2994_v41 }
0x11b8   :  { %2408 = vmatpush3.msra.mxu0 %v2994_v41 }
0x11b9   :  { %2409 = vmatprep.subr.mxu0 %v3001_v42 }
0x11ba   :  { %2410 = vmatpush3.msra.mxu0 %v3001_v42 }
0x11bb   :  { %2411 = vmatprep.subr.mxu0 %v3008_v43 }
0x11bc   :  { %2412 = vmatpush3.msra.mxu0 %v3008_v43  ;;  %v3395_v43 = vld [vmem:[%s3847_s2 + $0x70] sm:$0xff] }
0x11bd   :  { %2413 = vmatprep.subr.mxu0 %v3015_v44 }
0x11be   :  { %2414 = vmatpush3.msra.mxu0 %v3015_v44  ;;  %v3402_v44 = vld [vmem:[%s3847_s2 + $0x68] sm:$0xff] }
0x11bf   :  { %2415 = vmatprep.subr.mxu0 %v3022_v45 }
0x11c0   :  { %2416 = vmatpush3.msra.mxu0 %v3022_v45  ;;  %v3408_v45 = vld [vmem:[%s3847_s2 + $0x60] sm:$0xff] }
0x11c1   :  { %2417 = vmatprep.subr.mxu0 %v3029_v46 }
0x11c2   :  { %2418 = vmatpush3.msra.mxu0 %v3029_v46  ;;  %v3414_v46 = vld [vmem:[%s3847_s2 + $0x58] sm:$0xff] }
0x11c3   :  { %1550 = vmatprep.subr.mxu0 %v3381_v34 }
0x1267   :  { %v3384_v35 = vpop.f32.mrf.mxu0 }
0x1269   :  { %v1070_v36 = vpop.f32.mrf.mxu0 }
0x126a   :  { %v1079_v37 = vadd.f32 %v1070_v36, %v3057_v59 }
0x126b   :  { %v3387_v38 = vpop.f32.mrf.mxu0 }
0x126c   :  { %2608 = vtanh.f32 %v1079_v37  ;;  %v2727_v37 = vmov 3  }
0x126d   :  { %v1076_v39 = vpop.f32.mrf.mxu0  ;;  %2541 = vset.pattern.permute.xlu1 %v2727_v37  ;;  %2540 = vset.pattern.permute.xlu0 %v2727_v37 }
0x126e   :  { %v1080_v40 = vadd.f32 %v1076_v39, %v3052_v56 }
0x1270   :  { %2610 = vtanh.f32 %v1080_v40 }
0x1279   :  { %v2609_v41 = vpop.eup %2608 }
0x127a   :  { %2419 = vmatprep.mubr.msk.f32.mxu0 %vm72_vm0, %v2609_v41 }
0x127d   :  { %v2611_v42 = vpop.eup %2610 }
0x127e   :  { %2420 = vmatmul.mubr.msk.f32.vlgmr.msra.gmra.mxu0 %vm72_vm0, %v2611_v42 }
0x127f   :  { %1551 = vmatpush1.msra.mxu0 %v3395_v43  ;;  %1598 = vmatprep.mubr.f32.mxu0 %v2719_v2 }
0x1280   :  { %1552 = vmatprep.subr.mxu0 %v3402_v44 }
0x1281   :  { %1553 = vmatpush1.msra.mxu0 %v3408_v45 }
0x1282   :  { %1554 = vmatprep.subr.mxu0 %v3414_v46 }
0x1283   :  { %1555 = vmatpush1.msra.mxu0 %v3420_v47 }
0x1284   :  { %1556 = vmatprep.subr.mxu0 %v3426_v53 }
0x1285   :  { %1557 = vmatpush1.msra.mxu0 %v3432_v63 }
0x1286   :  { %1558 = vmatprep.subr.mxu0 %v3438_v57 }
0x1287   :  { %1559 = vmatpush1.msra.mxu0 %v3444_v12 }
0x1288   :  { %1560 = vmatprep.subr.mxu0 %v3450_v9 }
0x1289   :  { %1561 = vmatpush1.msra.mxu0 %v3456_v3 }
0x128a   :  { %1562 = vmatprep.subr.mxu0 %v3462_v5 }
0x128b   :  { %1563 = vmatpush1.msra.mxu0 %v3468_v6 }
0x128c   :  { %1564 = vmatprep.subr.mxu0 %v3474_v7 }
0x128d   :  { %1565 = vmatpush1.msra.mxu0 %v3480_v8 }
0x128e   :  { %2453 = vmatprep.subr.mxu0 %v3346_v32 }
0x133e   :  { %v2421_v10 = vpop.f32.mrf.mxu0 }
0x133f   :  { %v1167_v11 = vsel %vm356_vm1, %v2421_v10, -inf }
0x1340   :  { %1168 = vmax.xlane.f32.xlu0 %v1167_v11  ;;  %v1155_v13 = vpop.f32.mrf.mxu0 }
0x1341   :  { %v1164_v48 = vsel %vm356_vm1, %v1155_v13, -inf }
0x1342   :  { %1165 = vmax.xlane.f32.xlu1 %v1164_v48 }
0x13c9   :  { %v1169_v14 = vpop.xlane.xlu0 %1168 }
0x13ca   :  { %v1171_v16 = vsub.f32 %v2421_v10, %v1169_v14 }
0x13cb   :  { %v1166_v17 = vpop.xlane.xlu1 %1165 }
0x13cc   :  { %v1174_v60 = vmul.f32 1.442695, %v1171_v16  ;;  %v1170_v19 = vsub.f32 %v1155_v13, %v1166_v17 }
0x13ce   :  { %2612 = vpow2.f32 %v1174_v60  ;;  %v1172_v20 = vmul.f32 1.442695, %v1170_v19 }
0x13d0   :  { %2614 = vpow2.f32 %v1172_v20 }
0x13db   :  { %v2613_v22 = vpop.eup %2612 }
0x13dc   :  { %v1179_v25 = vsel %vm356_vm1, %v2613_v22, 0.0 }
0x13dd   :  { %v2615_v29 = vpop.eup %2614  ;;  %1180 = vadd.xlane.f32.xlu1 %v1179_v25 }
0x13de   :  { %v1176_v21 = vsel %vm356_vm1, %v2615_v29, 0.0 }
0x13df   :  { %1177 = vadd.xlane.f32.xlu0 %v1176_v21 }
0x1466   :  { %v1181_v54 = vpop.xlane.xlu1 %1180 }
0x1467   :  { %2616 = vrcp.f32 %v1181_v54 }
0x1468   :  { %v1178_v62 = vpop.xlane.xlu0 %1177 }
0x1469   :  { %2618 = vrcp.f32 %v1178_v62 }
0x1474   :  { %v2617_v1 = vpop.eup %2616 }
0x1475   :  { %v1185_v28 = vmul.f32 %v2617_v1, %v2613_v22 }
0x1476   :  { %v2619_v33 = vpop.eup %2618 }
0x1477   :  { %v1187_v15 = vmul.f32 %v1185_v28, %v3087_v50  ;;  %v1183_v4 = vmul.f32 %v2619_v33, %v2615_v29 }
0x1479   :  { %v1191_v52 = vsel %vm356_vm1, %v1187_v15, 0.0  ;;  %v1186_v30 = vmul.f32 %v1183_v4, %v3091_v0 }
0x147a   :  { %1192 = vadd.xlane.f32.xlu1 %v1191_v52 }
0x147b   :  { %v1188_v36 = vsel %vm356_vm1, %v1186_v30, 0.0 }
0x147c   :  { %1189 = vadd.xlane.f32.xlu0 %v1188_v36 }
0x1503   :  { %v1193_v39 = vpop.xlane.xlu1 %1192 }
0x1504   :  { %v1195_v40 = vadd.f32 %v1193_v39, %v3101_v27 }
0x1505   :  { %v1190_v41 = vpop.xlane.xlu0 %1189 }
0x1506   :  { %v1194_v42 = vadd.f32 %v1190_v41, %v3104_v31  ;;  %1203 = vperm.xlu1 %2541, %v1195_v40  }
0x1508   :  { %1198 = vperm.xlu0 %2540, %v1194_v42  }
0x1581   :  { %v1204_v10 = vpop.permute.xlu1 %1203 }
0x1582   :  { %v1207_v11 = vmul.f32 %v1204_v10, %v3109_v51  ;;  %v3528_v10 = vld [vmem:[%s3849_s4 + $0x60] sm:$0xff] }
0x1583   :  { %v1199_v13 = vpop.permute.xlu0 %1198 }
0x1584   :  { %v1209_v48 = vadd.f32 %v1207_v11, %v3387_v38  ;;  %v1206_v14 = vmul.f32 %v1199_v13, %v3109_v51  ;;  %v3538_v13 = vld [vmem:[%s3849_s4 + $0x58] sm:$0xff] }
0x1586   :  { %v1211_v16 = vadd.f32 %v1209_v48, %v3114_v61  ;;  %v1208_v17 = vadd.f32 %v1206_v14, %v3384_v35  ;;  %v3545_v48 = vld [vmem:[%s3849_s4 + $0x50] sm:$0xff]  ;;  %v3552_v14 = vld [vmem:[%s3849_s4 + $0x48] sm:$0xff] }
0x1588   :  { %v1210_v60 = vadd.f32 %v1208_v17, %v3114_v61  ;;  %2620 = vtanh.f32 %v1211_v16  ;;  %v3559_v16 = vld [vmem:[%s3849_s4 + $0x40] sm:$0xff]  ;;  %v3566_v17 = vld [vmem:[%s3849_s4 + $0x38] sm:$0xff] }
0x158a   :  { %2622 = vtanh.f32 %v1210_v60  ;;  %v3573_v60 = vld [vmem:[%s3849_s4 + $0x30] sm:$0xff] }
0x1595   :  { %v2621_v19 = vpop.eup %2620 }
0x1596   :  { %v1215_v29 = vmul.f32 %v2621_v19, %v3124_v24  ;;  %v3580_v19 = vld [vmem:[%s3849_s4 + $0x28] sm:$0xff] }
0x1597   :  { %v2623_v20 = vpop.eup %2622 }
0x1598   :  { %v1214_v22 = vmul.f32 %v2623_v20, %v3124_v24  ;;  %v1217_v38 = vadd.f32 %v1215_v29, %v3127_v26  ;;  %v3587_v20 = vld [vmem:[%s3849_s4 + $0x20] sm:$0xff]  ;;  %v3608_v29 = vld [vmem:[%s3849_s4 + $0x8] sm:$0xff] }
0x159a   :  { %v1216_v25 = vadd.f32 %v1214_v22, %v3127_v26  ;;  %v1219_v15 = vmul.f32 %v1217_v38, %v3332_v18  ;;  %v3594_v22 = vld [vmem:[%s3849_s4 + $0x18] sm:$0xff] }
0x159c   :  { %1222 = vrot.lane.b32.xlu1 %v1216_v25, %s2723_s1  ;;  %v1218_v1 = vmul.f32 %v1216_v25, %v3328_v23 }
0x15a0   :  { %1224 = vrot.lane.b32.xlu1 %v1217_v38, %s2723_s1 }
0x160e   :  { %v1223_v21 = vpop.permute.xlu1 %1222 }
0x160f   :  { %v1228_v35 = vmul.f32 %v1223_v21, %v1216_v25 }
0x1611   :  { %1232 = vrot.lane.b32.xlu1 %v1228_v35, %s2724_s23 }
0x1612   :  { %v1225_v54 = vpop.permute.xlu1 %1224 }
0x1613   :  { %v1229_v62 = vmul.f32 %v1225_v54, %v1217_v38 }
0x1615   :  { %1234 = vrot.lane.b32.xlu1 %v1229_v62, %s2724_s23 }
0x1683   :  { %v1233_v28 = vpop.permute.xlu1 %1232 }
0x1684   :  { %v3509_v33 = vadd.f32 %v1233_v28, %v1218_v1 }
0x1686   :  { %2624 = vtanh.f32 %v3509_v33 }
0x1687   :  { %v1235_v4 = vpop.permute.xlu1 %1234 }
0x1688   :  { %v3513_v52 = vadd.f32 %v1235_v4, %v1219_v15 }
0x168a   :  { %2626 = vtanh.f32 %v3513_v52 }
0x1693   :  { %v2625_v30 = vpop.eup %2624 }
0x1694   :  { %1244 = vrot.lane.b32.xlu1 %v2625_v30, %s2723_s1 }
0x1697   :  { %v2627_v36 = vpop.eup %2626 }
0x1698   :  { %1246 = vrot.lane.b32.xlu1 %v2627_v36, %s2723_s1 }
0x1706   :  { %v1245_v37 = vpop.permute.xlu1 %1244 }
0x1707   :  { %v1250_v23 = vmul.f32 %v1245_v37, %v1216_v25  ;;  %v3601_v25 = vld [vmem:[%s3849_s4 + $0x10] sm:$0xff] }
0x1709   :  { %1254 = vrot.lane.b32.xlu1 %v1250_v23, %s2724_s23 }
0x170a   :  { %v1247_v39 = vpop.permute.xlu1 %1246 }
0x170b   :  { %v1251_v40 = vmul.f32 %v1247_v39, %v1217_v38  ;;  %v3615_v38 = vld [vmem:[%s3849_s4] sm:$0xff]  ;;  %s2731_s4 = smov 9  }
0x170d   :  { %1256 = vrot.lane.b32.xlu0 %v1251_v40, %s2724_s23 }
0x177b   :  { %v1255_v18 = vpop.permute.xlu1 %1254 }
0x177c   :  { %v1260_v41 = vsel %vm461_vm2, %v1255_v18, %v3509_v33 }
0x177d   :  { %2127 = vmatmul.mubr.msk.f32.vlgmr.msra.gmra.mxu1 %vm190_vm3, %v1260_v41 }
0x177e   :  { %1338 = vmatprep.mubr.f32.mxu1 %v2719_v2  ;;  %2423 = vmatpush3.msra.mxu1 %v3346_v32 }
0x177f   :  { %v1257_v42 = vpop.permute.xlu0 %1256  ;;  %2424 = vmatprep.subr.mxu1 %v3528_v10 }
0x1780   :  { %v1261_v11 = vsel %vm461_vm2, %v1257_v42, %v3513_v52  ;;  %2425 = vmatpush3.msra.mxu1 %v3528_v10  ;;  %v2728_v42 = vmov 4  }
0x1781   :  { %2128 = vmatmul.mubr.msk.f32.gmra.mxu1 %vm190_vm3, %v1261_v11  ;;  %2426 = vmatprep.subr.mxu1 %v3538_v13 }
0x1782   :  { %2427 = vmatpush3.msra.mxu1 %v3538_v13  ;;  %2542 = vset.pattern.permute.xlu1 %v2728_v42 }
0x1783   :  { %2428 = vmatprep.subr.mxu1 %v3545_v48  ;;  %2543 = vset.pattern.permute.xlu0 %v2728_v42 }
0x1784   :  { %2429 = vmatpush3.msra.mxu1 %v3545_v48 }
0x1785   :  { %2430 = vmatprep.subr.mxu1 %v3552_v14 }
0x1786   :  { %2431 = vmatpush3.msra.mxu1 %v3552_v14 }
0x1787   :  { %2432 = vmatprep.subr.mxu1 %v3559_v16 }
0x1788   :  { %2433 = vmatpush3.msra.mxu1 %v3559_v16 }
0x1789   :  { %2434 = vmatprep.subr.mxu1 %v3566_v17 }
0x178a   :  { %2435 = vmatpush3.msra.mxu1 %v3566_v17 }
0x178b   :  { %2436 = vmatprep.subr.mxu1 %v3573_v60 }
0x178c   :  { %2437 = vmatpush3.msra.mxu1 %v3573_v60 }
0x178d   :  { %2438 = vmatprep.subr.mxu1 %v3580_v19 }
0x178e   :  { %2439 = vmatpush3.msra.mxu1 %v3580_v19 }
0x178f   :  { %2440 = vmatprep.subr.mxu1 %v3587_v20 }
0x1790   :  { %2441 = vmatpush3.msra.mxu1 %v3587_v20 }
0x1791   :  { %2442 = vmatprep.subr.mxu1 %v3594_v22 }
0x1792   :  { %2443 = vmatpush3.msra.mxu1 %v3594_v22 }
0x1793   :  { %2444 = vmatprep.subr.mxu1 %v3601_v25 }
0x1794   :  { %2445 = vmatpush3.msra.mxu1 %v3601_v25 }
0x1795   :  { %2446 = vmatprep.subr.mxu1 %v3608_v29 }
0x1796   :  { %2447 = vmatpush3.msra.mxu1 %v3608_v29 }
0x1797   :  { %2448 = vmatprep.subr.mxu1 %v3615_v38 }
0x1798   :  { %2449 = vmatpush3.msra.mxu1 %v3615_v38 }
0x1799   :  { %1816 = vmatprep.subr.mxu1 %v3381_v34 }
0x183d   :  { %v3620_v21 = vpop.f32.mrf.mxu1 }
0x183f   :  { %v1336_v35 = vpop.f32.mrf.mxu1 }
0x1840   :  { %v1345_v54 = vadd.f32 %v1336_v35, %v3057_v59 }
0x1841   :  { %v3623_v62 = vpop.f32.mrf.mxu1 }
0x1842   :  { %2628 = vtanh.f32 %v1345_v54 }
0x1843   :  { %v1342_v1 = vpop.f32.mrf.mxu1 }
0x1844   :  { %v1346_v28 = vadd.f32 %v1342_v1, %v3052_v56 }
0x1846   :  { %2630 = vtanh.f32 %v1346_v28 }
0x184f   :  { %v2629_v15 = vpop.eup %2628 }
0x1850   :  { %2450 = vmatprep.mubr.msk.f32.mxu1 %vm72_vm0, %v2629_v15 }
0x1853   :  { %v2631_v4 = vpop.eup %2630 }
0x1854   :  { %2451 = vmatmul.mubr.msk.f32.vlgmr.msra.gmra.mxu1 %vm72_vm0, %v2631_v4 }
0x1855   :  { %1817 = vmatpush1.msra.mxu1 %v3395_v43  ;;  %1864 = vmatprep.mubr.f32.mxu1 %v2719_v2 }
0x1856   :  { %1818 = vmatprep.subr.mxu1 %v3402_v44 }
0x1857   :  { %1819 = vmatpush1.msra.mxu1 %v3408_v45 }
0x1858   :  { %1820 = vmatprep.subr.mxu1 %v3414_v46 }
0x1859   :  { %1821 = vmatpush1.msra.mxu1 %v3420_v47 }
0x185a   :  { %1822 = vmatprep.subr.mxu1 %v3426_v53 }
0x185b   :  { %1823 = vmatpush1.msra.mxu1 %v3432_v63 }
0x185c   :  { %1824 = vmatprep.subr.mxu1 %v3438_v57 }
0x185d   :  { %1825 = vmatpush1.msra.mxu1 %v3444_v12 }
0x185e   :  { %1826 = vmatprep.subr.mxu1 %v3450_v9 }
0x185f   :  { %1827 = vmatpush1.msra.mxu1 %v3456_v3 }
0x1860   :  { %1828 = vmatprep.subr.mxu1 %v3462_v5 }
0x1861   :  { %1829 = vmatpush1.msra.mxu1 %v3468_v6 }
0x1862   :  { %1830 = vmatprep.subr.mxu1 %v3474_v7 }
0x1863   :  { %1831 = vmatpush1.msra.mxu1 %v3480_v8 }
0x1864   :  { %2484 = vmatprep.subr.mxu1 %v3346_v32 }
0x1914   :  { %v2452_v34 = vpop.f32.mrf.mxu1 }
0x1915   :  { %v1433_v43 = vsel %vm356_vm1, %v2452_v34, -inf }
0x1916   :  { %1434 = vmax.xlane.f32.xlu0 %v1433_v43  ;;  %v1421_v44 = vpop.f32.mrf.mxu1 }
0x1917   :  { %v1430_v45 = vsel %vm356_vm1, %v1421_v44, -inf }
0x1918   :  { %1431 = vmax.xlane.f32.xlu1 %v1430_v45 }
0x199f   :  { %v1435_v46 = vpop.xlane.xlu0 %1434 }
0x19a0   :  { %v1437_v47 = vsub.f32 %v2452_v34, %v1435_v46 }
0x19a1   :  { %v1432_v53 = vpop.xlane.xlu1 %1431 }
0x19a2   :  { %v1436_v63 = vsub.f32 %v1421_v44, %v1432_v53  ;;  %v1440_v57 = vmul.f32 1.442695, %v1437_v47 }
0x19a4   :  { %v1438_v12 = vmul.f32 1.442695, %v1436_v63 }
0x19a6   :  { %2632 = vpow2.f32 %v1438_v12 }
0x19a7   :  { %2634 = vpow2.f32 %v1440_v57 }
0x19b3   :  { %v2633_v9 = vpop.eup %2632 }
0x19b4   :  { %v1442_v3 = vsel %vm356_vm1, %v2633_v9, 0.0  ;;  %v2635_v5 = vpop.eup %2634 }
0x19b5   :  { %1443 = vadd.xlane.f32.xlu0 %v1442_v3  ;;  %v1445_v6 = vsel %vm356_vm1, %v2635_v5, 0.0 }
0x19b9   :  { %1446 = vadd.xlane.f32.xlu0 %v1445_v6 }
0x1a3e   :  { %v1444_v7 = vpop.xlane.xlu0 %1443 }
0x1a3f   :  { %2636 = vrcp.f32 %v1444_v7 }
0x1a42   :  { %v1447_v8 = vpop.xlane.xlu0 %1446 }
0x1a43   :  { %2638 = vrcp.f32 %v1447_v8 }
0x1a4c   :  { %v2637_v30 = vpop.eup %2636 }
0x1a4d   :  { %v1449_v36 = vmul.f32 %v2637_v30, %v2633_v9 }
0x1a4f   :  { %v1452_v37 = vmul.f32 %v1449_v36, %v3091_v0 }
0x1a50   :  { %v2639_v23 = vpop.eup %2638 }
0x1a51   :  { %v1454_v39 = vsel %vm356_vm1, %v1452_v37, 0.0  ;;  %v1451_v40 = vmul.f32 %v2639_v23, %v2635_v5 }
0x1a52   :  { %1455 = vadd.xlane.f32.xlu1 %v1454_v39 }
0x1a53   :  { %v1453_v18 = vmul.f32 %v1451_v40, %v3087_v50 }
0x1a55   :  { %v1457_v41 = vsel %vm356_vm1, %v1453_v18, 0.0 }
0x1a56   :  { %1458 = vadd.xlane.f32.xlu0 %v1457_v41 }
0x1adb   :  { %v1456_v11 = vpop.xlane.xlu1 %1455 }
0x1adc   :  { %v1460_v35 = vadd.f32 %v1456_v11, %v3104_v31 }
0x1ade   :  { %1464 = vperm.xlu1 %2542, %v1460_v35  }
0x1adf   :  { %v1459_v54 = vpop.xlane.xlu0 %1458 }
0x1ae0   :  { %v1461_v1 = vadd.f32 %v1459_v54, %v3101_v27 }
0x1ae2   :  { %1469 = vperm.xlu0 %2543, %v1461_v1  }
0x1b59   :  { %v1465_v28 = vpop.permute.xlu1 %1464 }
0x1b5a   :  { %v1472_v15 = vmul.f32 %v1465_v28, %v3109_v51 }
0x1b5c   :  { %v1474_v4 = vadd.f32 %v1472_v15, %v3620_v21 }
0x1b5d   :  { %v1470_v34 = vpop.permute.xlu0 %1469 }
0x1b5e   :  { %v1476_v43 = vadd.f32 %v1474_v4, %v3114_v61  ;;  %v1473_v44 = vmul.f32 %v1470_v34, %v3109_v51 }
0x1b60   :  { %2640 = vtanh.f32 %v1476_v43  ;;  %v1475_v45 = vadd.f32 %v1473_v44, %v3623_v62 }
0x1b62   :  { %v1477_v46 = vadd.f32 %v1475_v45, %v3114_v61 }
0x1b64   :  { %2642 = vtanh.f32 %v1477_v46 }
0x1b6d   :  { %v2641_v47 = vpop.eup %2640 }
0x1b6e   :  { %v1480_v53 = vmul.f32 %v2641_v47, %v3124_v24 }
0x1b70   :  { %v1482_v63 = vadd.f32 %v1480_v53, %v3127_v26 }
0x1b71   :  { %v2643_v57 = vpop.eup %2642 }
0x1b72   :  { %1488 = vrot.lane.b32.xlu1 %v1482_v63, %s2723_s1  ;;  %v1481_v21 = vmul.f32 %v2643_v57, %v3124_v24  ;;  %v1484_v6 = vmul.f32 %v1482_v63, %v3509_v33 }
0x1b74   :  { %v1483_v12 = vadd.f32 %v1481_v21, %v3127_v26 }
0x1b76   :  { %1490 = vrot.lane.b32.xlu1 %v1483_v12, %s2723_s1  ;;  %v1485_v30 = vmul.f32 %v1483_v12, %v3513_v52 }
0x1be4   :  { %v1489_v9 = vpop.permute.xlu1 %1488 }
0x1be5   :  { %v1494_v3 = vmul.f32 %v1489_v9, %v1482_v63 }
0x1be7   :  { %1498 = vrot.lane.b32.xlu1 %v1494_v3, %s2724_s23 }
0x1be8   :  { %v1491_v62 = vpop.permute.xlu1 %1490 }
0x1be9   :  { %v1495_v5 = vmul.f32 %v1491_v62, %v1483_v12 }
0x1beb   :  { %1500 = vrot.lane.b32.xlu1 %v1495_v5, %s2724_s23 }
0x1c59   :  { %v1499_v7 = vpop.permute.xlu1 %1498 }
0x1c5a   :  { %v3670_v8 = vadd.f32 %v1499_v7, %v1484_v6 }
0x1c5c   :  { %2644 = vtanh.f32 %v3670_v8 }
0x1c5d   :  { %v1501_v36 = vpop.permute.xlu1 %1500 }
0x1c5e   :  { %v3674_v37 = vadd.f32 %v1501_v36, %v1485_v30 }
0x1c60   :  { %2646 = vtanh.f32 %v3674_v37 }
0x1c69   :  { %v2645_v23 = vpop.eup %2644 }
0x1c6a   :  { %1510 = vrot.lane.b32.xlu1 %v2645_v23, %s2723_s1 }
0x1c6d   :  { %v2647_v39 = vpop.eup %2646 }
0x1c6e   :  { %1512 = vrot.lane.b32.xlu1 %v2647_v39, %s2723_s1 }
0x1cdc   :  { %v1511_v40 = vpop.permute.xlu1 %1510 }
0x1cdd   :  { %v1516_v33 = vmul.f32 %v1511_v40, %v1482_v63 }
0x1cdf   :  { %1520 = vrot.lane.b32.xlu1 %v1516_v33, %s2724_s23 }
0x1ce0   :  { %v1513_v18 = vpop.permute.xlu1 %1512 }
0x1ce1   :  { %v1517_v41 = vmul.f32 %v1513_v18, %v1483_v12 }
0x1ce3   :  { %1522 = vrot.lane.b32.xlu1 %v1517_v41, %s2724_s23 }
0x1d51   :  { %v1521_v52 = vpop.permute.xlu1 %1520 }
0x1d52   :  { %v1526_v42 = vsel %vm461_vm2, %v1521_v52, %v3670_v8 }
0x1d53   :  { %2131 = vmatmul.mubr.msk.f32.vlgmr.msra.gmra.mxu0 %vm190_vm3, %v1526_v42 }
0x1d54   :  { %1604 = vmatprep.mubr.f32.mxu0 %v2719_v2  ;;  %2454 = vmatpush3.msra.mxu0 %v3346_v32 }
0x1d55   :  { %v1523_v11 = vpop.permute.xlu1 %1522  ;;  %2455 = vmatprep.subr.mxu0 %v3528_v10 }
0x1d56   :  { %v1527_v35 = vsel %vm461_vm2, %v1523_v11, %v3674_v37  ;;  %2456 = vmatpush3.msra.mxu0 %v3528_v10  ;;  %v2729_v11 = vmov 5  }
0x1d57   :  { %2132 = vmatmul.mubr.msk.f32.gmra.mxu0 %vm190_vm3, %v1527_v35  ;;  %2457 = vmatprep.subr.mxu0 %v3538_v13 }
0x1d58   :  { %2458 = vmatpush3.msra.mxu0 %v3538_v13  ;;  %2544 = vset.pattern.permute.xlu1 %v2729_v11 }
0x1d59   :  { %2459 = vmatprep.subr.mxu0 %v3545_v48  ;;  %2545 = vset.pattern.permute.xlu0 %v2729_v11 }
0x1d5a   :  { %2460 = vmatpush3.msra.mxu0 %v3545_v48 }
0x1d5b   :  { %2461 = vmatprep.subr.mxu0 %v3552_v14 }
0x1d5c   :  { %2462 = vmatpush3.msra.mxu0 %v3552_v14 }
0x1d5d   :  { %2463 = vmatprep.subr.mxu0 %v3559_v16 }
0x1d5e   :  { %2464 = vmatpush3.msra.mxu0 %v3559_v16 }
0x1d5f   :  { %2465 = vmatprep.subr.mxu0 %v3566_v17 }
0x1d60   :  { %2466 = vmatpush3.msra.mxu0 %v3566_v17 }
0x1d61   :  { %2467 = vmatprep.subr.mxu0 %v3573_v60 }
0x1d62   :  { %2468 = vmatpush3.msra.mxu0 %v3573_v60 }
0x1d63   :  { %2469 = vmatprep.subr.mxu0 %v3580_v19 }
0x1d64   :  { %2470 = vmatpush3.msra.mxu0 %v3580_v19 }
0x1d65   :  { %2471 = vmatprep.subr.mxu0 %v3587_v20 }
0x1d66   :  { %2472 = vmatpush3.msra.mxu0 %v3587_v20 }
0x1d67   :  { %2473 = vmatprep.subr.mxu0 %v3594_v22 }
0x1d68   :  { %2474 = vmatpush3.msra.mxu0 %v3594_v22 }
0x1d69   :  { %2475 = vmatprep.subr.mxu0 %v3601_v25 }
0x1d6a   :  { %2476 = vmatpush3.msra.mxu0 %v3601_v25 }
0x1d6b   :  { %2477 = vmatprep.subr.mxu0 %v3608_v29 }
0x1d6c   :  { %2478 = vmatpush3.msra.mxu0 %v3608_v29 }
0x1d6d   :  { %2479 = vmatprep.subr.mxu0 %v3615_v38 }
0x1d6e   :  { %2480 = vmatpush3.msra.mxu0 %v3615_v38 }
0x1e13   :  { %v1600_v54 = vpop.f32.mrf.mxu0 }
0x1e15   :  { %v1602_v1 = vpop.f32.mrf.mxu0 }
0x1e16   :  { %v1611_v28 = vadd.f32 %v1602_v1, %v3057_v59 }
0x1e17   :  { %v1606_v15 = vpop.f32.mrf.mxu0 }
0x1e18   :  { %2648 = vtanh.f32 %v1611_v28 }
0x1e19   :  { %v1608_v4 = vpop.f32.mrf.mxu0 }
0x1e1a   :  { %v1612_v34 = vadd.f32 %v1608_v4, %v3052_v56 }
0x1e1c   :  { %2650 = vtanh.f32 %v1612_v34 }
0x1e25   :  { %v2649_v43 = vpop.eup %2648 }
0x1e26   :  { %2481 = vmatprep.mubr.msk.f32.mxu0 %vm72_vm0, %v2649_v43 }
0x1e29   :  { %v2651_v44 = vpop.eup %2650 }
0x1e2a   :  { %2482 = vmatmul.mubr.msk.f32.vlgmr.msra.gmra.mxu0 %vm72_vm0, %v2651_v44 }
0x1eea   :  { %v2483_v45 = vpop.f32.mrf.mxu0 }
0x1eeb   :  { %v1699_v46 = vsel %vm356_vm1, %v2483_v45, -inf }
0x1eec   :  { %1700 = vmax.xlane.f32.xlu1 %v1699_v46  ;;  %v1687_v47 = vpop.f32.mrf.mxu0 }
0x1eed   :  { %v1696_v53 = vsel %vm356_vm1, %v1687_v47, -inf }
0x1eee   :  { %1697 = vmax.xlane.f32.xlu0 %v1696_v53 }
0x1f75   :  { %v1701_v63 = vpop.xlane.xlu1 %1700 }
0x1f76   :  { %v1703_v57 = vsub.f32 %v2483_v45, %v1701_v63 }
0x1f77   :  { %v1698_v21 = vpop.xlane.xlu0 %1697 }
0x1f78   :  { %v1702_v12 = vsub.f32 %v1687_v47, %v1698_v21  ;;  %v1706_v9 = vmul.f32 1.442695, %v1703_v57 }
0x1f7a   :  { %v1704_v3 = vmul.f32 1.442695, %v1702_v12 }
0x1f7c   :  { %2652 = vpow2.f32 %v1704_v3 }
0x1f7d   :  { %2654 = vpow2.f32 %v1706_v9 }
0x1f89   :  { %v2653_v62 = vpop.eup %2652 }
0x1f8a   :  { %v1708_v5 = vsel %vm356_vm1, %v2653_v62, 0.0  ;;  %v2655_v6 = vpop.eup %2654 }
0x1f8b   :  { %1709 = vadd.xlane.f32.xlu0 %v1708_v5  ;;  %v1711_v7 = vsel %vm356_vm1, %v2655_v6, 0.0 }
0x1f8f   :  { %1712 = vadd.xlane.f32.xlu0 %v1711_v7 }
0x2014   :  { %v1710_v30 = vpop.xlane.xlu0 %1709 }
0x2015   :  { %2656 = vrcp.f32 %v1710_v30 }
0x2018   :  { %v1713_v36 = vpop.xlane.xlu0 %1712 }
0x2019   :  { %2658 = vrcp.f32 %v1713_v36 }
0x2022   :  { %v2657_v23 = vpop.eup %2656 }
0x2023   :  { %v1715_v39 = vmul.f32 %v2657_v23, %v2653_v62 }
0x2025   :  { %v1718_v40 = vmul.f32 %v1715_v39, %v3091_v0 }
0x2026   :  { %v2659_v33 = vpop.eup %2658 }
0x2027   :  { %v1720_v18 = vsel %vm356_vm1, %v1718_v40, 0.0  ;;  %v1717_v41 = vmul.f32 %v2659_v33, %v2655_v6 }
0x2028   :  { %1721 = vadd.xlane.f32.xlu1 %v1720_v18 }
0x2029   :  { %v1719_v52 = vmul.f32 %v1717_v41, %v3087_v50 }
0x202b   :  { %v1723_v42 = vsel %vm356_vm1, %v1719_v52, 0.0 }
0x202c   :  { %1724 = vadd.xlane.f32.xlu0 %v1723_v42 }
0x20b1   :  { %v1722_v35 = vpop.xlane.xlu1 %1721 }
0x20b2   :  { %v1726_v1 = vadd.f32 %v1722_v35, %v3104_v31 }
0x20b4   :  { %1730 = vperm.xlu1 %2544, %v1726_v1  }
0x20b5   :  { %v1725_v28 = vpop.xlane.xlu0 %1724 }
0x20b6   :  { %v1727_v4 = vadd.f32 %v1725_v28, %v3101_v27 }
0x20b8   :  { %1735 = vperm.xlu0 %2545, %v1727_v4  }
0x212f   :  { %v1731_v34 = vpop.permute.xlu1 %1730 }
0x2130   :  { %v1738_v43 = vmul.f32 %v1731_v34, %v3109_v51 }
0x2132   :  { %v1740_v44 = vadd.f32 %v1738_v43, %v1600_v54 }
0x2133   :  { %v1736_v45 = vpop.permute.xlu0 %1735 }
0x2134   :  { %v1742_v46 = vadd.f32 %v1740_v44, %v3114_v61  ;;  %v1739_v47 = vmul.f32 %v1736_v45, %v3109_v51 }
0x2136   :  { %2660 = vtanh.f32 %v1742_v46  ;;  %v1741_v53 = vadd.f32 %v1739_v47, %v1606_v15 }
0x2138   :  { %v1743_v63 = vadd.f32 %v1741_v53, %v3114_v61 }
0x213a   :  { %2662 = vtanh.f32 %v1743_v63 }
0x2143   :  { %v2661_v57 = vpop.eup %2660 }
0x2144   :  { %v1746_v21 = vmul.f32 %v2661_v57, %v3124_v24 }
0x2146   :  { %v1748_v12 = vadd.f32 %v1746_v21, %v3127_v26 }
0x2147   :  { %v2663_v9 = vpop.eup %2662 }
0x2148   :  { %1754 = vrot.lane.b32.xlu1 %v1748_v12, %s2723_s1  ;;  %v1747_v54 = vmul.f32 %v2663_v9, %v3124_v24  ;;  %v1750_v7 = vmul.f32 %v1748_v12, %v3670_v8 }
0x214a   :  { %v1749_v3 = vadd.f32 %v1747_v54, %v3127_v26 }
0x214c   :  { %1756 = vrot.lane.b32.xlu1 %v1749_v3, %s2723_s1  ;;  %v1751_v23 = vmul.f32 %v1749_v3, %v3674_v37 }
0x21ba   :  { %v1755_v62 = vpop.permute.xlu1 %1754 }
0x21bb   :  { %v1760_v5 = vmul.f32 %v1755_v62, %v1748_v12 }
0x21bd   :  { %1764 = vrot.lane.b32.xlu1 %v1760_v5, %s2724_s23 }
0x21be   :  { %v1757_v15 = vpop.permute.xlu1 %1756 }
0x21bf   :  { %v1761_v6 = vmul.f32 %v1757_v15, %v1749_v3 }
0x21c1   :  { %1766 = vrot.lane.b32.xlu1 %v1761_v6, %s2724_s23 }
0x222f   :  { %v1765_v30 = vpop.permute.xlu1 %1764 }
0x2230   :  { %v3742_v36 = vadd.f32 %v1765_v30, %v1750_v7 }
0x2232   :  { %2664 = vtanh.f32 %v3742_v36 }
0x2233   :  { %v1767_v39 = vpop.permute.xlu1 %1766 }
0x2234   :  { %v3746_v40 = vadd.f32 %v1767_v39, %v1751_v23 }
0x2236   :  { %2666 = vtanh.f32 %v3746_v40 }
0x223f   :  { %v2665_v33 = vpop.eup %2664 }
0x2240   :  { %1776 = vrot.lane.b32.xlu1 %v2665_v33, %s2723_s1 }
0x2243   :  { %v2667_v18 = vpop.eup %2666 }
0x2244   :  { %1778 = vrot.lane.b32.xlu1 %v2667_v18, %s2723_s1 }
0x22b2   :  { %v1777_v41 = vpop.permute.xlu1 %1776 }
0x22b3   :  { %v1782_v8 = vmul.f32 %v1777_v41, %v1748_v12 }
0x22b5   :  { %1786 = vrot.lane.b32.xlu1 %v1782_v8, %s2724_s23 }
0x22b6   :  { %v1779_v52 = vpop.permute.xlu1 %1778 }
0x22b7   :  { %v1783_v42 = vmul.f32 %v1779_v52, %v1749_v3  ;;  %v2730_v3 = vmov 6  }
0x22b8   :  { %2546 = vset.pattern.permute.xlu0 %v2730_v3  ;;  %2547 = vset.pattern.permute.xlu1 %v2730_v3 }
0x22b9   :  { %1788 = vrot.lane.b32.xlu1 %v1783_v42, %s2724_s23 }
0x2327   :  { %v1787_v37 = vpop.permute.xlu1 %1786 }
0x2328   :  { %v1792_v11 = vsel %vm461_vm2, %v1787_v37, %v3742_v36 }
0x2329   :  { %2135 = vmatmul.mubr.msk.f32.vlgmr.msra.gmra.mxu1 %vm190_vm3, %v1792_v11 }
0x232a   :  { %1870 = vmatprep.mubr.f32.mxu1 %v2719_v2  ;;  %2485 = vmatpush3.msra.mxu1 %v3346_v32 }
0x232b   :  { %v1789_v35 = vpop.permute.xlu1 %1788  ;;  %2486 = vmatprep.subr.mxu1 %v3528_v10 }
0x232c   :  { %v1793_v1 = vsel %vm461_vm2, %v1789_v35, %v3746_v40  ;;  %2487 = vmatpush3.msra.mxu1 %v3528_v10 }
0x232d   :  { %2136 = vmatmul.mubr.msk.f32.gmra.mxu1 %vm190_vm3, %v1793_v1  ;;  %2488 = vmatprep.subr.mxu1 %v3538_v13 }
0x232e   :  { %2489 = vmatpush3.msra.mxu1 %v3538_v13 }
0x232f   :  { %2490 = vmatprep.subr.mxu1 %v3545_v48 }
0x2330   :  { %2491 = vmatpush3.msra.mxu1 %v3545_v48 }
0x2331   :  { %2492 = vmatprep.subr.mxu1 %v3552_v14 }
0x2332   :  { %2493 = vmatpush3.msra.mxu1 %v3552_v14 }
0x2333   :  { %2494 = vmatprep.subr.mxu1 %v3559_v16 }
0x2334   :  { %2495 = vmatpush3.msra.mxu1 %v3559_v16 }
0x2335   :  { %2496 = vmatprep.subr.mxu1 %v3566_v17 }
0x2336   :  { %2497 = vmatpush3.msra.mxu1 %v3566_v17 }
0x2337   :  { %2498 = vmatprep.subr.mxu1 %v3573_v60 }
0x2338   :  { %2499 = vmatpush3.msra.mxu1 %v3573_v60 }
0x2339   :  { %2500 = vmatprep.subr.mxu1 %v3580_v19 }
0x233a   :  { %2501 = vmatpush3.msra.mxu1 %v3580_v19 }
0x233b   :  { %2502 = vmatprep.subr.mxu1 %v3587_v20 }
0x233c   :  { %2503 = vmatpush3.msra.mxu1 %v3587_v20 }
0x233d   :  { %2504 = vmatprep.subr.mxu1 %v3594_v22 }
0x233e   :  { %2505 = vmatpush3.msra.mxu1 %v3594_v22 }
0x233f   :  { %2506 = vmatprep.subr.mxu1 %v3601_v25 }
0x2340   :  { %2507 = vmatpush3.msra.mxu1 %v3601_v25 }
0x2341   :  { %2508 = vmatprep.subr.mxu1 %v3608_v29 }
0x2342   :  { %2509 = vmatpush3.msra.mxu1 %v3608_v29 }
0x2343   :  { %2510 = vmatprep.subr.mxu1 %v3615_v38 }
0x2344   :  { %2511 = vmatpush3.msra.mxu1 %v3615_v38 }
0x23e9   :  { %v1866_v2 = vpop.f32.mrf.mxu1 }
0x23eb   :  { %v1868_v32 = vpop.f32.mrf.mxu1 }
0x23ec   :  { %v1877_v10 = vadd.f32 %v1868_v32, %v3057_v59 }
0x23ed   :  { %v1872_v13 = vpop.f32.mrf.mxu1 }
0x23ee   :  { %2668 = vtanh.f32 %v1877_v10  ;;  %v2052_v10 = vsub.s32 5, %v3038_v49 }
0x23ef   :  { %v1874_v48 = vpop.f32.mrf.mxu1 }
0x23f0   :  { %v1878_v14 = vadd.f32 %v1874_v48, %v3052_v56  ;;  %v2718_v48 = vld [vmem:[%s3850_s5] sm:$0xff]  ;;  %s2733_s5 = smov 126  }
0x23f2   :  { %2670 = vtanh.f32 %v1878_v14 }
0x23fb   :  { %v2669_v16 = vpop.eup %2668 }
0x23fc   :  { %2512 = vmatprep.mubr.msk.f32.mxu1 %vm72_vm0, %v2669_v16 }
0x23ff   :  { %v2671_v17 = vpop.eup %2670 }
0x2400   :  { %2513 = vmatmul.mubr.msk.f32.vlgmr.msra.gmra.mxu1 %vm72_vm0, %v2671_v17 }
0x24c0   :  { %v2514_v60 = vpop.f32.mrf.mxu1 }
0x24c1   :  { %v1965_v19 = vsel %vm356_vm1, %v2514_v60, -inf }
0x24c2   :  { %1966 = vmax.xlane.f32.xlu1 %v1965_v19  ;;  %v1953_v20 = vpop.f32.mrf.mxu1 }
0x24c3   :  { %v1962_v22 = vsel %vm356_vm1, %v1953_v20, -inf }
0x24c4   :  { %1963 = vmax.xlane.f32.xlu0 %v1962_v22 }
0x254b   :  { %v1967_v59 = vpop.xlane.xlu1 %1966 }
0x254c   :  { %v1969_v25 = vsub.f32 %v2514_v60, %v1967_v59 }
0x254d   :  { %v1964_v29 = vpop.xlane.xlu0 %1963 }
0x254e   :  { %v1968_v38 = vsub.f32 %v1953_v20, %v1964_v29  ;;  %v1972_v56 = vmul.f32 1.442695, %v1969_v25 }
0x2550   :  { %v1970_v28 = vmul.f32 1.442695, %v1968_v38 }
0x2552   :  { %2672 = vpow2.f32 %v1970_v28 }
0x2553   :  { %2674 = vpow2.f32 %v1972_v56 }
0x255f   :  { %v2673_v4 = vpop.eup %2672 }
0x2560   :  { %v1974_v34 = vsel %vm356_vm1, %v2673_v4, 0.0  ;;  %v2675_v43 = vpop.eup %2674 }
0x2561   :  { %1975 = vadd.xlane.f32.xlu0 %v1974_v34  ;;  %v1977_v44 = vsel %vm356_vm1, %v2675_v43, 0.0 }
0x2565   :  { %1978 = vadd.xlane.f32.xlu0 %v1977_v44 }
0x25ea   :  { %v1976_v45 = vpop.xlane.xlu0 %1975 }
0x25eb   :  { %2676 = vrcp.f32 %v1976_v45 }
0x25ee   :  { %v1979_v46 = vpop.xlane.xlu0 %1978 }
0x25ef   :  { %2678 = vrcp.f32 %v1979_v46 }
0x25f8   :  { %v2677_v47 = vpop.eup %2676 }
0x25f9   :  { %v3795_v53 = vmul.f32 %v2677_v47, %v2673_v4 }
0x25fb   :  { %v1984_v63 = vmul.f32 %v3795_v53, %v3091_v0 }
0x25fc   :  { %v2679_v57 = vpop.eup %2678 }
0x25fd   :  { %v1986_v21 = vsel %vm356_vm1, %v1984_v63, 0.0  ;;  %v3800_v12 = vmul.f32 %v2679_v57, %v2675_v43  ;;  %v2092_v43 = vsub.s32 6, %v3038_v49 }
0x25fe   :  { %1987 = vadd.xlane.f32.xlu0 %v1986_v21 }
0x25ff   :  { %v1985_v9 = vmul.f32 %v3800_v12, %v3087_v50  ;;  %v2093_v45 = vrot.slane %v2718_v48, %v2092_v43 }
0x2601   :  { %v1989_v54 = vsel %vm356_vm1, %v1985_v9, 0.0 }
0x2602   :  { %1990 = vadd.xlane.f32.xlu1 %v1989_v54 }
0x2687   :  { %v1988_v62 = vpop.xlane.xlu0 %1987 }
0x2688   :  { %v1992_v5 = vadd.f32 %v1988_v62, %v3104_v31 }
0x268a   :  { %1996 = vperm.xlu0 %2546, %v1992_v5  }
0x268b   :  { %v1991_v0 = vpop.xlane.xlu1 %1990 }
0x268c   :  { %v1993_v15 = vadd.f32 %v1991_v0, %v3101_v27 }
0x268e   :  { %2001 = vperm.xlu1 %2547, %v1993_v15   ;;  %2074 = vrot.lane.b32.xlu0 %v3054_v58, %s2731_s4 }
0x2705   :  { %v1997_v6 = vpop.permute.xlu0 %1996 }
0x2706   :  { %v2004_v50 = vmul.f32 %v1997_v6, %v3109_v51 }
0x2708   :  { %v2006_v7 = vadd.f32 %v2004_v50, %v1866_v2 }
0x2709   :  { %v2002_v30 = vpop.permute.xlu1 %2001  ;;  %v2075_v22 = vpop.permute.xlu0 %2074 }
0x270a   :  { %v2008_v23 = vadd.f32 %v2006_v7, %v3114_v61  ;;  %v2005_v39 = vmul.f32 %v2002_v30, %v3109_v51  ;;  %v2080_v59 = vmul.f32 %v2075_v22, %v3795_v53 }
0x270c   :  { %2680 = vtanh.f32 %v2008_v23  ;;  %v2007_v31 = vadd.f32 %v2005_v39, %v1872_v13  ;;  %v2082_v25 = vsel %vm356_vm1, %v2080_v59, 0.0 }
0x270e   :  { %v2009_v33 = vadd.f32 %v2007_v31, %v3114_v61 }
0x2710   :  { %2682 = vtanh.f32 %v2009_v33 }
0x2719   :  { %v2681_v27 = vpop.eup %2680 }
0x271a   :  { %v2012_v18 = vmul.f32 %v2681_v27, %v3124_v24 }
0x271c   :  { %v2014_v41 = vadd.f32 %v2012_v18, %v3127_v26 }
0x271d   :  { %v2683_v58 = vpop.eup %2682 }
0x271e   :  { %2020 = vrot.lane.b32.xlu1 %v2014_v41, %s2723_s1  ;;  %v2013_v8 = vmul.f32 %v2683_v58, %v3124_v24  ;;  %v2016_v2 = vmul.f32 %v2014_v41, %v3742_v36 }
0x2720   :  { %v2015_v52 = vadd.f32 %v2013_v8, %v3127_v26 }
0x2722   :  { %2022 = vrot.lane.b32.xlu1 %v2015_v52, %s2723_s1  ;;  %v2017_v35 = vmul.f32 %v2015_v52, %v3746_v40  ;;  %v2053_v40 = vrot.slane %v2718_v48, %v2052_v10 }
0x2790   :  { %v2021_v51 = vpop.permute.xlu1 %2020 }
0x2791   :  { %v2026_v42 = vmul.f32 %v2021_v51, %v2014_v41 }
0x2793   :  { %2030 = vrot.lane.b32.xlu1 %v2026_v42, %s2724_s23 }
0x2794   :  { %v2023_v61 = vpop.permute.xlu1 %2022 }
0x2795   :  { %v2027_v37 = vmul.f32 %v2023_v61, %v2015_v52 }
0x2797   :  { %2032 = vrot.lane.b32.xlu1 %v2027_v37, %s2724_s23 }
0x2805   :  { %v2031_v11 = vpop.permute.xlu1 %2030 }
0x2806   :  { %v2036_v24 = vadd.f32 %v2031_v11, %v2016_v2 }
0x2809   :  { %v2033_v1 = vpop.permute.xlu1 %2032 }
0x280a   :  { %v2037_v32 = vadd.f32 %v2033_v1, %v2017_v35 }
0x280c   :  { %2684 = vtanh.f32 %v2037_v32 }
0x280d   :  { %2686 = vtanh.f32 %v2036_v24 }
0x2819   :  { %v2685_v26 = vpop.eup %2684 }
0x281a   :  { %2044 = vrot.lane.b32.xlu1 %v2685_v26, %s2723_s1  ;;  %v2687_v13 = vpop.eup %2686 }
0x281e   :  { %2042 = vrot.lane.b32.xlu1 %v2687_v13, %s2723_s1 }
0x2822   :  { %2055 = vrot.lane.b32.xlu1 %v2053_v40, %s2732_s10 }
0x2826   :  { %2076 = vrot.lane.b32.xlu1 %v3049_v55, %s2731_s4 }
0x288c   :  { %v2045_v36 = vpop.permute.xlu1 %2044 }
0x288d   :  { %v2049_v16 = vmul.f32 %v2045_v36, %v2015_v52 }
0x2890   :  { %v2043_v14 = vpop.permute.xlu1 %2042 }
0x2891   :  { %v2048_v17 = vmul.f32 %v2043_v14, %v2014_v41 }
0x2894   :  { %v2056_v60 = vpop.permute.xlu1 %2055 }
0x2895   :  { %v2058_v19 = vmul.f32 %v2056_v60, %v2048_v17  ;;  %v2059_v20 = vmul.f32 %v2056_v60, %v2049_v16 }
0x2897   :  { %2064 = vrot.lane.b32.xlu1 %v2059_v20, %s2724_s23  ;;  %2062 = vrot.lane.b32.xlu0 %v2058_v19, %s2724_s23 }
0x2898   :  { %v2077_v29 = vpop.permute.xlu1 %2076 }
0x2899   :  { %v2081_v56 = vmul.f32 %v2077_v29, %v3800_v12 }
0x289b   :  { %v2085_v34 = vsel %vm356_vm1, %v2081_v56, 0.0 }
0x28b6   :  { %2083 = vadd.xlane.f32.xlu0 %v2082_v25 }
0x2909   :  { %v2065_v38 = vpop.permute.xlu1 %2064  ;;  %v2063_v55 = vpop.permute.xlu0 %2062 }
0x290a   :  { %v2071_v28 = vsel %vm461_vm2, %v2065_v38, 0.0  ;;  %v2068_v4 = vsel %vm461_vm2, %v2063_v55, 0.0 }
0x290b   :  { %2072 = vadd.xlane.f32.xlu1 %v2071_v28  ;;  %2069 = vadd.xlane.f32.xlu0 %v2068_v4 }
0x290f   :  { %2086 = vadd.xlane.f32.xlu0 %v2085_v34 }
0x293f   :  { %v2084_v44 = vpop.xlane.xlu0 %2083 }
0x2994   :  { %v2070_v46 = vpop.xlane.xlu0 %2069  ;;  %v2073_v63 = vpop.xlane.xlu1 %2072 }
0x2995   :  { %v2088_v47 = vadd.f32 %v2084_v44, %v2070_v46 }
0x2997   :  { %v2094_v53 = vadd.f32 %v2093_v45, %v2088_v47 }
0x2998   :  { %v2087_v57 = vpop.xlane.xlu0 %2086 }
0x2999   :  { %v2089_v21 = vadd.f32 %v2087_v57, %v2073_v63  ;;  %2098 = vrot.lane.b32.xlu1 %v2094_v53, %s2733_s5 }
0x299b   :  { %v2095_v12 = vadd.f32 %v2093_v45, %v2089_v21 }
0x299d   :  { %2100 = vrot.lane.b32.xlu0 %v2095_v12, %s2733_s5 }
0x2a0b   :  { %v2099_v9 = vpop.permute.xlu1 %2098 }
0x2a0c   :  { %2105 = vst.msk [vmem:[%s3852_s6] sm:$0xff] %vm2104_vm4, %v2099_v9 }
0x2a0f   :  { %v2101_v54 = vpop.permute.xlu0 %2100 }
0x2a10   :  { %2106 = vst.msk [vmem:[%s3852_s6 + $0x8] sm:$0xff] %vm2104_vm4, %v2101_v54 }

</bundles_post_ra>
